<compile_context>
chip_gen: v5e
topology: v5e:2x2
jax: 0.10.0
libtpu: 0.0.40
codegen_flags: <defaults>
</compile_context>

<pallas_src>
from functools import partial

import jax
import jax.numpy as jnp
from jax import lax
from jax.experimental import pallas as pl
from jax.experimental.pallas import tpu as pltpu


def _tagger_kernel(x_ref,        # [T, tb, E]   time-major embeddings (batch tile)
                   wih_ref,      # [E, 8H]      input weights, both dirs, (i,f,o,g)
                   whh_ref,      # [2H, 8H] (merged) or [2H, 4H] (split)
                   wl_ref,       # [2H, 8]      plain Linear(2H->8) weights (w_l.T)
                   bg_ref,       # [1, 8H]      gate bias (b_ih + b_hh, both dirs)
                   bl_ref,       # [1, 8]       Linear(2H->8) bias
                   wc0_ref,      # [1, 8]       classifier row 0
                   bc0_ref,      # [1, 1]       classifier bias 0 (SMEM)
                   out_ref,      # [1, T, tb]   tag_space[:, :, 0], time-major tile
                   xg_f_ref,     # scratch [T, tb, 4H]
                   xg_b_ref,     # scratch [T, tb, 4H]
                   hf_ref,       # scratch [T, tb, H]
                   hb_ref,       # scratch [T, tb, H]
                   *, merge_whh, split_xg, unroll):
    T, TB, E = x_ref.shape
    H = hf_ref.shape[-1]
    G = 4 * H

    # ---- 1. input projection, both directions, all timesteps ----
    x2 = x_ref[...].reshape(T * TB, E)
    bg = bg_ref[...]
    if split_xg:
        # 4H not a 128 multiple: two matmuls avoid an unaligned lane split of
        # the big [T*tb, 8H] activation (weight slice relayout is tiny).
        wih = wih_ref[...]
        xg_f_ref[...] = (jnp.dot(x2, wih[:, :G], preferred_element_type=jnp.float32)
                         + bg[:, :G]).reshape(T, TB, G)
        xg_b_ref[...] = (jnp.dot(x2, wih[:, G:], preferred_element_type=jnp.float32)
                         + bg[:, G:]).reshape(T, TB, G)
    else:
        xg = jnp.dot(x2, wih_ref[...], preferred_element_type=jnp.float32) + bg
        xg_f_ref[...] = xg[:, :G].reshape(T, TB, G)   # lane split at 4H (aligned)
        xg_b_ref[...] = xg[:, G:].reshape(T, TB, G)

    whh = whh_ref[...]   # hoisted weight load

    # ---- 2. fused fwd+bwd recurrence (latency-bound path) ----
    # Only matmul(s) + gate math + two full-width hidden-state stores per step;
    # the Linear(2H->8) projection has been moved to the epilogue.
    zH = jnp.zeros((TB, H), jnp.float32)

    def step(t, carry):
        h_f, h_b, c_f, c_b = carry
        if merge_whh:
            # one block-diagonal matmul covers both directions (2H <= 128)
            h2 = jnp.concatenate([h_f, h_b], axis=1)                    # [tb, 2H]
            r = jnp.dot(h2, whh, preferred_element_type=jnp.float32)    # [tb, 8H]
            r_f, r_b = r[:, :G], r[:, G:]
        else:
            r_f = jnp.dot(h_f, whh[:H], preferred_element_type=jnp.float32)
            r_b = jnp.dot(h_b, whh[H:], preferred_element_type=jnp.float32)

        g_f = xg_f_ref[t] + r_f            # fwd gates at time t        (i,f,o,g)
        g_b = xg_b_ref[T - 1 - t] + r_b    # bwd gates at time T-1-t    (i,f,o,g)

        s_f = jax.nn.sigmoid(g_f[:, :3 * H])   # i, f, o  (one EUP region / dir)
        s_b = jax.nn.sigmoid(g_b[:, :3 * H])
        gg_f = jnp.tanh(g_f[:, 3 * H:])
        gg_b = jnp.tanh(g_b[:, 3 * H:])

        c_f = s_f[:, H:2 * H] * c_f + s_f[:, :H] * gg_f
        c_b = s_b[:, H:2 * H] * c_b + s_b[:, :H] * gg_b
        h_f = s_f[:, 2 * H:] * jnp.tanh(c_f)
        h_b = s_b[:, 2 * H:] * jnp.tanh(c_b)

        hf_ref[t] = h_f                    # full-buffer-width stores, no masking
        hb_ref[T - 1 - t] = h_b
        return (h_f, h_b, c_f, c_b)

    lax.fori_loop(0, T, step, (zH, zH, zH, zH), unroll=unroll)

    # ---- 3. epilogue: one-pass Linear(2H->8), tanh, classifier channel 0 ----
    wl = wl_ref[...]
    zf = jnp.dot(hf_ref[...].reshape(T * TB, H), wl[:H],
                 preferred_element_type=jnp.float32)                    # [T*tb, 8]
    zb = jnp.dot(hb_ref[...].reshape(T * TB, H), wl[H:],
                 preferred_element_type=jnp.float32)
    z = jnp.tanh((zf + zb + bl_ref[...]).reshape(T, TB, 8))
    # classifier channel 0: VPU multiply + lane reduce (no N=1 matmul)
    out_ref[0] = jnp.sum(z * wc0_ref[...], axis=-1) + bc0_ref[0, 0]     # [T, tb]


def _pack_params(params, merge_whh):
    """Pre-transpose / permute / merge the PyTorch-layout weights (runs in XLA)."""
    H = params["whh_f"].shape[1]
    f32 = jnp.float32

    def perm_T(w):
        # PyTorch gate rows (i, f, g, o) -> columns ordered (i, f, o, g), transposed.
        i, f, g, o = w[0:H], w[H:2 * H], w[2 * H:3 * H], w[3 * H:4 * H]
        return jnp.concatenate([i, f, o, g], axis=0).T.astype(f32)

    def perm_bias(b_ih, b_hh):
        b = (b_ih + b_hh).astype(f32)
        i, f, g, o = b[0:H], b[H:2 * H], b[2 * H:3 * H], b[3 * H:4 * H]
        return jnp.concatenate([i, f, o, g])

    wih = jnp.concatenate([perm_T(params["wih_f"]),
                           perm_T(params["wih_b"])], axis=1)          # [E, 8H]
    bg = jnp.concatenate([perm_bias(params["b_ih_f"], params["b_hh_f"]),
                          perm_bias(params["b_ih_b"], params["b_hh_b"])]
                         ).reshape(1, 8 * H)

    whh_f = perm_T(params["whh_f"])                                   # [H, 4H]
    whh_b = perm_T(params["whh_b"])
    if merge_whh:
        z4 = jnp.zeros((H, 4 * H), f32)
        whh = jnp.concatenate([jnp.concatenate([whh_f, z4], axis=1),
                               jnp.concatenate([z4, whh_b], axis=1)],
                              axis=0)                                 # [2H, 8H]
    else:
        whh = jnp.concatenate([whh_f, whh_b], axis=0)                 # [2H, 4H]

    wl = params["w_l"].T.astype(f32)                                  # [2H, 8]
    bl = params["b_l"].reshape(1, 8).astype(f32)
    wc0 = params["w_c"][0:1, :].astype(f32)                           # [1, 8]
    bc0 = params["b_c"][0:1].reshape(1, 1).astype(f32)
    return wih, whh, wl, bg, bl, wc0, bc0


def extractive_tagger_forward(sentence, params):
    """sentence: int32 [B, T].  Returns float32 [B, T] == tag_space[:, :, 0]."""
    B, T = sentence.shape
    H = params["whh_f"].shape[1]
    E = params["wih_f"].shape[1]
    G = 4 * H

    # Block-diagonal whh merge only while 2H fits one MXU contraction on every
    # generation and the 4H lane split is aligned.
    merge_whh = (2 * H <= 128) and (G % 128 == 0)
    split_xg = (G % 128 != 0)

    # ---- VMEM-budget-driven batch tile ----
    try:
        vmem_cap = int(pltpu.get_tpu_info().vmem_capacity_bytes)
    except Exception:
        vmem_cap = 64 << 20        # conservative (v7x per-TC) fallback
    budget = int(0.70 * vmem_cap)
    # f32 bytes per (T * tb) column: x (double-buffered) + xg scratches + h
    # scratches + out (double-buffered).
    per_col = 4 * T * (2 * E + 8 * H + 2 * H + 2)
    max_tb = max(8, budget // max(per_col, 1))
    if B <= max_tb:
        tb, nb = B, 1
        # even when a single tile fits, split big batches so the "parallel"
        # grid axis can shard across v7x's two TensorCores
        if B >= 256 and B % 256 == 0:
            tb, nb = B // 2, 2
    else:
        tb = max(128, (max_tb // 128) * 128)     # lane-dense, 8-aligned batch tile
        nb = -(-B // tb)
    B_pad = tb * nb

    whh_cols = 8 * H if merge_whh else 4 * H
    weight_bytes = 4 * (E * 8 * H + 2 * H * whh_cols + 2 * H * 8 + 8 * H + 24)
    est_bytes = per_col * tb + 2 * weight_bytes
    vmem_limit = int(min(0.9 * vmem_cap, max(32 << 20, 1.5 * est_bytes)))

    unroll = True if T <= 32 else 4   # spill-guarded unroll for long sequences

    # ---- time-major embedding gather (no [B,T,E]->[T,B,E] transpose) ----
    sent_tm = sentence.T                                   # [T, B] (cheap, ids only)
    if B_pad > B:
        sent_tm = jnp.pad(sent_tm, ((0, 0), (0, B_pad - B)))
    x = params["embedding"][sent_tm].astype(jnp.float32)   # [T, B_pad, E]

    wih, whh, wl, bg, bl, wc0, bc0 = _pack_params(params, merge_whh)

    kernel = partial(_tagger_kernel, merge_whh=merge_whh,
                     split_xg=split_xg, unroll=unroll)

    out_tm = pl.pallas_call(
        kernel,
        out_shape=jax.ShapeDtypeStruct((nb, T, tb), jnp.float32),
        grid=(nb,),
        in_specs=[
            pl.BlockSpec((T, tb, E), lambda b: (0, b, 0)),              # x
            pl.BlockSpec((E, 8 * H), lambda b: (0, 0)),                 # wih
            pl.BlockSpec(tuple(whh.shape), lambda b: (0, 0)),           # whh
            pl.BlockSpec((2 * H, 8), lambda b: (0, 0)),                 # wl
            pl.BlockSpec((1, 8 * H), lambda b: (0, 0)),                 # bg
            pl.BlockSpec((1, 8), lambda b: (0, 0)),                     # bl
            pl.BlockSpec((1, 8), lambda b: (0, 0)),                     # wc0
            pl.BlockSpec((1, 1), lambda b: (0, 0),
                         memory_space=pltpu.MemorySpace.SMEM),          # bc0
        ],
        out_specs=pl.BlockSpec((1, T, tb), lambda b: (b, 0, 0)),
        scratch_shapes=[
            pltpu.VMEM((T, tb, G), jnp.float32),   # fwd input-gate projections
            pltpu.VMEM((T, tb, G), jnp.float32),   # bwd input-gate projections
            pltpu.VMEM((T, tb, H), jnp.float32),   # fwd hidden states
            pltpu.VMEM((T, tb, H), jnp.float32),   # bwd hidden states
        ],
        compiler_params=pltpu.CompilerParams(
            dimension_semantics=("parallel",),
            vmem_limit_bytes=vmem_limit),
    )(x, wih, whh, wl, bg, bl, wc0, bc0)

    # (nb, T, tb) -> (T, B_pad) -> (B, T)
    out = jnp.transpose(out_tm, (1, 0, 2)).reshape(T, B_pad)[:, :B]
    return out.T


# ---------------- pure-JAX reference (emulates the PyTorch forward) ----------------
def _reference_forward(sentence, params):
    emb = params["embedding"][sentence].astype(jnp.float32)   # [B, T, E]
    H = params["whh_f"].shape[1]

    def run_dir(x_tm, wih, whh, b_ih, b_hh):
        def step(carry, xt):
            h, c = carry
            g = xt @ wih.T + b_ih + h @ whh.T + b_hh
            i = jax.nn.sigmoid(g[:, 0 * H:1 * H])
            f = jax.nn.sigmoid(g[:, 1 * H:2 * H])
            gg = jnp.tanh(g[:, 2 * H:3 * H])
            o = jax.nn.sigmoid(g[:, 3 * H:4 * H])
            c = f * c + i * gg
            h = o * jnp.tanh(c)
            return (h, c), h
        B = x_tm.shape[1]
        h0 = jnp.zeros((B, H), jnp.float32)
        _, hs = lax.scan(step, (h0, h0), x_tm)
        return hs                                              # [T, B, H]

    x_tm = jnp.transpose(emb, (1, 0, 2))
    hf = run_dir(x_tm, params["wih_f"], params["whh_f"],
                 params["b_ih_f"], params["b_hh_f"])
    hb = run_dir(x_tm[::-1], params["wih_b"], params["whh_b"],
                 params["b_ih_b"], params["b_hh_b"])[::-1]
    out = jnp.concatenate([hf, hb], axis=-1)                   # [T, B, 2H]
    out = jnp.transpose(out, (1, 0, 2))                        # [B, T, 2H]
    z = jnp.tanh(out @ params["w_l"].T + params["b_l"])
    tag_space = z @ params["w_c"].T + params["b_c"]
    return tag_space[:, :, 0]


if __name__ == "__main__":
    # small, deterministic config (bidirection=True, layers=1 -> dropout is a no-op)
    B, T = 2, 8
    E, H = 32, 32
    OUT_DIM = 4
    VOCAB = 50

    key = jax.random.PRNGKey(0)
    keys = jax.random.split(key, 16)
    s = 1.0 / jnp.sqrt(H)

    def u(k, shape):
        return jax.random.uniform(k, shape, jnp.float32, -s, s)

    params = {
        "embedding": jax.random.normal(keys[0], (VOCAB, E), jnp.float32),
        # forward-direction LSTM
        "wih_f": u(keys[1], (4 * H, E)),
        "whh_f": u(keys[2], (4 * H, H)),
        "b_ih_f": u(keys[3], (4 * H,)),
        "b_hh_f": u(keys[4], (4 * H,)),
        # reverse-direction LSTM
        "wih_b": u(keys[5], (4 * H, E)),
        "whh_b": u(keys[6], (4 * H, H)),
        "b_ih_b": u(keys[7], (4 * H,)),
        "b_hh_b": u(keys[8], (4 * H,)),
        # Linear(2H -> 8)
        "w_l": u(keys[9], (8, 2 * H)),
        "b_l": u(keys[10], (8,)),
        # classifier Linear(8 -> OUT_DIM)
        "w_c": u(keys[11], (OUT_DIM, 8)),
        "b_c": u(keys[12], (OUT_DIM,)),
    }
    # TODO(synk): multi-layer LSTM stacking / inter-layer dropout not implemented
    # (layers=1 here, and dropout is inactive in eval anyway).

    sentence = jax.random.randint(keys[13], (B, T), 0, VOCAB, dtype=jnp.int32)

    out = extractive_tagger_forward(sentence, params)
    out = jax.block_until_ready(out)

    ref = _reference_forward(sentence, params)
    assert out.shape == (B, T)
    assert jnp.allclose(out, ref, atol=1e-4, rtol=1e-4), \
        f"max abs err {jnp.max(jnp.abs(out - ref))}"

    print("KERNEL_OK")
</pallas_src>

<mosaic_0001>
module attributes {stable_mosaic.version = 11 : i64} {
  func.func @_tagger_kernel(%arg0: i32, %arg1: memref<8x2x32xf32, #tpu.memory_space<vmem>>, %arg2: memref<32x256xf32, #tpu.memory_space<vmem>>, %arg3: memref<64x256xf32, #tpu.memory_space<vmem>>, %arg4: memref<64x8xf32, #tpu.memory_space<vmem>>, %arg5: memref<1x256xf32, #tpu.memory_space<vmem>>, %arg6: memref<1x8xf32, #tpu.memory_space<vmem>>, %arg7: memref<1x8xf32, #tpu.memory_space<vmem>>, %arg8: memref<1x1xf32, #tpu.memory_space<smem>>, %arg9: memref<1x8x2xf32, #tpu.memory_space<vmem>>, %arg10: memref<8x2x128xf32, #tpu.memory_space<vmem>>, %arg11: memref<8x2x128xf32, #tpu.memory_space<vmem>>, %arg12: memref<8x2x32xf32, #tpu.memory_space<vmem>>, %arg13: memref<8x2x32xf32, #tpu.memory_space<vmem>>) attributes {dimension_semantics = [#tpu.dimension_semantics<parallel>], iteration_bounds = array<i64: 1>, scalar_prefetch = 0 : i64, scratch_operands = 4 : i64, tpu.core_type = #tpu.core_type<tc>, window_params = [{transform_indices = @transform_0, window_bounds = array<i64: 8, 2, 32>}, {pipeline_mode = #tpu.pipeline_mode<synchronous>, transform_indices = @transform_1, window_bounds = array<i64: 32, 256>}, {pipeline_mode = #tpu.pipeline_mode<synchronous>, transform_indices = @transform_2, window_bounds = array<i64: 64, 256>}, {pipeline_mode = #tpu.pipeline_mode<synchronous>, transform_indices = @transform_3, window_bounds = array<i64: 64, 8>}, {pipeline_mode = #tpu.pipeline_mode<synchronous>, transform_indices = @transform_4, window_bounds = array<i64: 1, 256>}, {pipeline_mode = #tpu.pipeline_mode<synchronous>, transform_indices = @transform_5, window_bounds = array<i64: 1, 8>}, {pipeline_mode = #tpu.pipeline_mode<synchronous>, transform_indices = @transform_6, window_bounds = array<i64: 1, 8>}, {transform_indices = @transform_7, window_bounds = array<i64: 1, 1>}, {transform_indices = @transform_8, window_bounds = array<i64: 1, 8, 2>}]} {
    %c0 = arith.constant 0 : index
    %c0_0 = arith.constant 0 : index
    %c0_1 = arith.constant 0 : index
    %0 = vector.load %arg1[%c0, %c0_0, %c0_1] : memref<8x2x32xf32, #tpu.memory_space<vmem>>, vector<8x2x32xf32>
    %1 = vector.shape_cast %0 : vector<8x2x32xf32> to vector<16x32xf32>
    %c0_2 = arith.constant 0 : index
    %c0_3 = arith.constant 0 : index
    %2 = vector.load %arg5[%c0_2, %c0_3] : memref<1x256xf32, #tpu.memory_space<vmem>>, vector<1x256xf32>
    %c0_4 = arith.constant 0 : index
    %c0_5 = arith.constant 0 : index
    %3 = vector.load %arg2[%c0_4, %c0_5] : memref<32x256xf32, #tpu.memory_space<vmem>>, vector<32x256xf32>
    %cst = arith.constant dense<0.000000e+00> : vector<16x256xf32>
    %4 = tpu.matmul %1, %3, %cst {dimension_numbers = #tpu.dot_dimension_numbers<[1], [0], [0], [1], [0, 0, 1, 1], [], []>} : vector<16x32xf32>, vector<32x256xf32>, vector<16x256xf32> -> vector<16x256xf32>
    %5 = vector.broadcast %2 : vector<1x256xf32> to vector<16x256xf32>
    %6 = arith.addf %4, %5 : vector<16x256xf32>
    %7 = vector.extract_strided_slice %6 {offsets = [0, 0], sizes = [16, 128], strides = [1, 1]} : vector<16x256xf32> to vector<16x128xf32>
    %8 = vector.shape_cast %7 : vector<16x128xf32> to vector<8x2x128xf32>
    %c0_6 = arith.constant 0 : index
    %c0_7 = arith.constant 0 : index
    %c0_8 = arith.constant 0 : index
    %9 = vector.load %arg10[%c0_6, %c0_7, %c0_8] : memref<8x2x128xf32, #tpu.memory_space<vmem>>, vector<8x2x128xf32>
    tpu.vector_store %arg10[%c0_6, %c0_7, %c0_8], %8 {strides = array<i32>} : memref<8x2x128xf32, #tpu.memory_space<vmem>>, vector<8x2x128xf32>,
    %10 = vector.extract_strided_slice %6 {offsets = [0, 128], sizes = [16, 128], strides = [1, 1]} : vector<16x256xf32> to vector<16x128xf32>
    %11 = vector.shape_cast %10 : vector<16x128xf32> to vector<8x2x128xf32>
    %c0_9 = arith.constant 0 : index
    %c0_10 = arith.constant 0 : index
    %c0_11 = arith.constant 0 : index
    %12 = vector.load %arg11[%c0_9, %c0_10, %c0_11] : memref<8x2x128xf32, #tpu.memory_space<vmem>>, vector<8x2x128xf32>
    tpu.vector_store %arg11[%c0_9, %c0_10, %c0_11], %11 {strides = array<i32>} : memref<8x2x128xf32, #tpu.memory_space<vmem>>, vector<8x2x128xf32>,
    %c0_12 = arith.constant 0 : index
    %c0_13 = arith.constant 0 : index
    %13 = vector.load %arg3[%c0_12, %c0_13] : memref<64x256xf32, #tpu.memory_space<vmem>>, vector<64x256xf32>
    %cst_14 = arith.constant 0.000000e+00 : f32
    %14 = vector.broadcast %cst_14 : f32 to vector<2x32xf32>
    %c0_i32 = arith.constant 0 : i32
    %15 = tpu.concatenate %14, %14 in 1 : vector<2x32xf32>, vector<2x32xf32> -> vector<2x64xf32>
    %cst_15 = arith.constant dense<0.000000e+00> : vector<2x256xf32>
    %16 = tpu.matmul %15, %13, %cst_15 {dimension_numbers = #tpu.dot_dimension_numbers<[1], [0], [0], [1], [0, 0, 1, 1], [], []>} : vector<2x64xf32>, vector<64x256xf32>, vector<2x256xf32> -> vector<2x256xf32>
    %17 = vector.extract_strided_slice %16 {offsets = [0, 0], sizes = [2, 128], strides = [1, 1]} : vector<2x256xf32> to vector<2x128xf32>
    %18 = vector.extract_strided_slice %16 {offsets = [0, 128], sizes = [2, 128], strides = [1, 1]} : vector<2x256xf32> to vector<2x128xf32>
    %19 = arith.index_cast %c0_i32 : i32 to index
    %c0_16 = arith.constant 0 : index
    %c0_17 = arith.constant 0 : index
    %20 = vector.load %arg10[%19, %c0_16, %c0_17] : memref<8x2x128xf32, #tpu.memory_space<vmem>>, vector<1x2x128xf32>
    %21 = vector.shape_cast %20 : vector<1x2x128xf32> to vector<2x128xf32>
    %22 = arith.addf %21, %17 : vector<2x128xf32>
    %c7_i32 = arith.constant 7 : i32
    %23 = arith.subi %c7_i32, %c0_i32 : i32
    %24 = arith.index_cast %23 : i32 to index
    %c0_18 = arith.constant 0 : index
    %c0_19 = arith.constant 0 : index
    %25 = vector.load %arg11[%24, %c0_18, %c0_19] : memref<8x2x128xf32, #tpu.memory_space<vmem>>, vector<1x2x128xf32>
    %26 = vector.shape_cast %25 : vector<1x2x128xf32> to vector<2x128xf32>
    %27 = arith.addf %26, %18 : vector<2x128xf32>
    %28 = vector.extract_strided_slice %22 {offsets = [0, 0], sizes = [2, 96], strides = [1, 1]} : vector<2x128xf32> to vector<2x96xf32>
    %29 = arith.negf %28 : vector<2x96xf32>
    %30 = math.exp %29 : vector<2x96xf32>
    %cst_20 = arith.constant 1.000000e+00 : f32
    %31 = vector.broadcast %cst_20 : f32 to vector<2x96xf32>
    %32 = arith.addf %31, %30 : vector<2x96xf32>
    %33 = arith.divf %31, %32 : vector<2x96xf32>
    %34 = vector.extract_strided_slice %27 {offsets = [0, 0], sizes = [2, 96], strides = [1, 1]} : vector<2x128xf32> to vector<2x96xf32>
    %35 = arith.negf %34 : vector<2x96xf32>
    %36 = math.exp %35 : vector<2x96xf32>
    %cst_21 = arith.constant 1.000000e+00 : f32
    %37 = vector.broadcast %cst_21 : f32 to vector<2x96xf32>
    %38 = arith.addf %37, %36 : vector<2x96xf32>
    %39 = arith.divf %37, %38 : vector<2x96xf32>
    %40 = vector.extract_strided_slice %22 {offsets = [0, 96], sizes = [2, 32], strides = [1, 1]} : vector<2x128xf32> to vector<2x32xf32>
    %41 = math.tanh %40 : vector<2x32xf32>
    %42 = vector.extract_strided_slice %27 {offsets = [0, 96], sizes = [2, 32], strides = [1, 1]} : vector<2x128xf32> to vector<2x32xf32>
    %43 = math.tanh %42 : vector<2x32xf32>
    %44 = vector.extract_strided_slice %33 {offsets = [0, 32], sizes = [2, 32], strides = [1, 1]} : vector<2x96xf32> to vector<2x32xf32>
    %45 = arith.mulf %44, %14 : vector<2x32xf32>
    %46 = vector.extract_strided_slice %33 {offsets = [0, 0], sizes = [2, 32], strides = [1, 1]} : vector<2x96xf32> to vector<2x32xf32>
    %47 = arith.mulf %46, %41 : vector<2x32xf32>
    %48 = arith.addf %45, %47 : vector<2x32xf32>
    %49 = vector.extract_strided_slice %39 {offsets = [0, 32], sizes = [2, 32], strides = [1, 1]} : vector<2x96xf32> to vector<2x32xf32>
    %50 = arith.mulf %49, %14 : vector<2x32xf32>
    %51 = vector.extract_strided_slice %39 {offsets = [0, 0], sizes = [2, 32], strides = [1, 1]} : vector<2x96xf32> to vector<2x32xf32>
    %52 = arith.mulf %51, %43 : vector<2x32xf32>
    %53 = arith.addf %50, %52 : vector<2x32xf32>
    %54 = vector.extract_strided_slice %33 {offsets = [0, 64], sizes = [2, 32], strides = [1, 1]} : vector<2x96xf32> to vector<2x32xf32>
    %55 = math.tanh %48 : vector<2x32xf32>
    %56 = arith.mulf %54, %55 : vector<2x32xf32>
    %57 = vector.extract_strided_slice %39 {offsets = [0, 64], sizes = [2, 32], strides = [1, 1]} : vector<2x96xf32> to vector<2x32xf32>
    %58 = math.tanh %53 : vector<2x32xf32>
    %59 = arith.mulf %57, %58 : vector<2x32xf32>
    %60 = arith.index_cast %c0_i32 : i32 to index
    %c0_22 = arith.constant 0 : index
    %c0_23 = arith.constant 0 : index
    %61 = vector.load %arg12[%60, %c0_22, %c0_23] : memref<8x2x32xf32, #tpu.memory_space<vmem>>, vector<1x2x32xf32>
    %62 = vector.shape_cast %61 : vector<1x2x32xf32> to vector<2x32xf32>
    %63 = vector.shape_cast %56 : vector<2x32xf32> to vector<1x2x32xf32>
    tpu.vector_store %arg12[%60, %c0_22, %c0_23], %63 {strides = array<i32>} : memref<8x2x32xf32, #tpu.memory_space<vmem>>, vector<1x2x32xf32>,
    %c7_i32_24 = arith.constant 7 : i32
    %64 = arith.subi %c7_i32_24, %c0_i32 : i32
    %65 = arith.index_cast %64 : i32 to index
    %c0_25 = arith.constant 0 : index
    %c0_26 = arith.constant 0 : index
    %66 = vector.load %arg13[%65, %c0_25, %c0_26] : memref<8x2x32xf32, #tpu.memory_space<vmem>>, vector<1x2x32xf32>
    %67 = vector.shape_cast %66 : vector<1x2x32xf32> to vector<2x32xf32>
    %68 = vector.shape_cast %59 : vector<2x32xf32> to vector<1x2x32xf32>
    tpu.vector_store %arg13[%65, %c0_25, %c0_26], %68 {strides = array<i32>} : memref<8x2x32xf32, #tpu.memory_space<vmem>>, vector<1x2x32xf32>,
    %c1_i32 = arith.constant 1 : i32
    %69 = tpu.concatenate %56, %59 in 1 : vector<2x32xf32>, vector<2x32xf32> -> vector<2x64xf32>
    %cst_27 = arith.constant dense<0.000000e+00> : vector<2x256xf32>
    %70 = tpu.matmul %69, %13, %cst_27 {dimension_numbers = #tpu.dot_dimension_numbers<[1], [0], [0], [1], [0, 0, 1, 1], [], []>} : vector<2x64xf32>, vector<64x256xf32>, vector<2x256xf32> -> vector<2x256xf32>
    %71 = vector.extract_strided_slice %70 {offsets = [0, 0], sizes = [2, 128], strides = [1, 1]} : vector<2x256xf32> to vector<2x128xf32>
    %72 = vector.extract_strided_slice %70 {offsets = [0, 128], sizes = [2, 128], strides = [1, 1]} : vector<2x256xf32> to vector<2x128xf32>
    %73 = arith.index_cast %c1_i32 : i32 to index
    %c0_28 = arith.constant 0 : index
    %c0_29 = arith.constant 0 : index
    %74 = vector.load %arg10[%73, %c0_28, %c0_29] : memref<8x2x128xf32, #tpu.memory_space<vmem>>, vector<1x2x128xf32>
    %75 = vector.shape_cast %74 : vector<1x2x128xf32> to vector<2x128xf32>
    %76 = arith.addf %75, %71 : vector<2x128xf32>
    %c7_i32_30 = arith.constant 7 : i32
    %77 = arith.subi %c7_i32_30, %c1_i32 : i32
    %78 = arith.index_cast %77 : i32 to index
    %c0_31 = arith.constant 0 : index
    %c0_32 = arith.constant 0 : index
    %79 = vector.load %arg11[%78, %c0_31, %c0_32] : memref<8x2x128xf32, #tpu.memory_space<vmem>>, vector<1x2x128xf32>
    %80 = vector.shape_cast %79 : vector<1x2x128xf32> to vector<2x128xf32>
    %81 = arith.addf %80, %72 : vector<2x128xf32>
    %82 = vector.extract_strided_slice %76 {offsets = [0, 0], sizes = [2, 96], strides = [1, 1]} : vector<2x128xf32> to vector<2x96xf32>
    %83 = arith.negf %82 : vector<2x96xf32>
    %84 = math.exp %83 : vector<2x96xf32>
    %cst_33 = arith.constant 1.000000e+00 : f32
    %85 = vector.broadcast %cst_33 : f32 to vector<2x96xf32>
    %86 = arith.addf %85, %84 : vector<2x96xf32>
    %87 = arith.divf %85, %86 : vector<2x96xf32>
    %88 = vector.extract_strided_slice %81 {offsets = [0, 0], sizes = [2, 96], strides = [1, 1]} : vector<2x128xf32> to vector<2x96xf32>
    %89 = arith.negf %88 : vector<2x96xf32>
    %90 = math.exp %89 : vector<2x96xf32>
    %cst_34 = arith.constant 1.000000e+00 : f32
    %91 = vector.broadcast %cst_34 : f32 to vector<2x96xf32>
    %92 = arith.addf %91, %90 : vector<2x96xf32>
    %93 = arith.divf %91, %92 : vector<2x96xf32>
    %94 = vector.extract_strided_slice %76 {offsets = [0, 96], sizes = [2, 32], strides = [1, 1]} : vector<2x128xf32> to vector<2x32xf32>
    %95 = math.tanh %94 : vector<2x32xf32>
    %96 = vector.extract_strided_slice %81 {offsets = [0, 96], sizes = [2, 32], strides = [1, 1]} : vector<2x128xf32> to vector<2x32xf32>
    %97 = math.tanh %96 : vector<2x32xf32>
    %98 = vector.extract_strided_slice %87 {offsets = [0, 32], sizes = [2, 32], strides = [1, 1]} : vector<2x96xf32> to vector<2x32xf32>
    %99 = arith.mulf %98, %48 : vector<2x32xf32>
    %100 = vector.extract_strided_slice %87 {offsets = [0, 0], sizes = [2, 32], strides = [1, 1]} : vector<2x96xf32> to vector<2x32xf32>
    %101 = arith.mulf %100, %95 : vector<2x32xf32>
    %102 = arith.addf %99, %101 : vector<2x32xf32>
    %103 = vector.extract_strided_slice %93 {offsets = [0, 32], sizes = [2, 32], strides = [1, 1]} : vector<2x96xf32> to vector<2x32xf32>
    %104 = arith.mulf %103, %53 : vector<2x32xf32>
    %105 = vector.extract_strided_slice %93 {offsets = [0, 0], sizes = [2, 32], strides = [1, 1]} : vector<2x96xf32> to vector<2x32xf32>
    %106 = arith.mulf %105, %97 : vector<2x32xf32>
    %107 = arith.addf %104, %106 : vector<2x32xf32>
    %108 = vector.extract_strided_slice %87 {offsets = [0, 64], sizes = [2, 32], strides = [1, 1]} : vector<2x96xf32> to vector<2x32xf32>
    %109 = math.tanh %102 : vector<2x32xf32>
    %110 = arith.mulf %108, %109 : vector<2x32xf32>
    %111 = vector.extract_strided_slice %93 {offsets = [0, 64], sizes = [2, 32], strides = [1, 1]} : vector<2x96xf32> to vector<2x32xf32>
    %112 = math.tanh %107 : vector<2x32xf32>
    %113 = arith.mulf %111, %112 : vector<2x32xf32>
    %114 = arith.index_cast %c1_i32 : i32 to index
    %c0_35 = arith.constant 0 : index
    %c0_36 = arith.constant 0 : index
    %115 = vector.load %arg12[%114, %c0_35, %c0_36] : memref<8x2x32xf32, #tpu.memory_space<vmem>>, vector<1x2x32xf32>
    %116 = vector.shape_cast %115 : vector<1x2x32xf32> to vector<2x32xf32>
    %117 = vector.shape_cast %110 : vector<2x32xf32> to vector<1x2x32xf32>
    tpu.vector_store %arg12[%114, %c0_35, %c0_36], %117 {strides = array<i32>} : memref<8x2x32xf32, #tpu.memory_space<vmem>>, vector<1x2x32xf32>,
    %c7_i32_37 = arith.constant 7 : i32
    %118 = arith.subi %c7_i32_37, %c1_i32 : i32
    %119 = arith.index_cast %118 : i32 to index
    %c0_38 = arith.constant 0 : index
    %c0_39 = arith.constant 0 : index
    %120 = vector.load %arg13[%119, %c0_38, %c0_39] : memref<8x2x32xf32, #tpu.memory_space<vmem>>, vector<1x2x32xf32>
    %121 = vector.shape_cast %120 : vector<1x2x32xf32> to vector<2x32xf32>
    %122 = vector.shape_cast %113 : vector<2x32xf32> to vector<1x2x32xf32>
    tpu.vector_store %arg13[%119, %c0_38, %c0_39], %122 {strides = array<i32>} : memref<8x2x32xf32, #tpu.memory_space<vmem>>, vector<1x2x32xf32>,
    %c2_i32 = arith.constant 2 : i32
    %123 = tpu.concatenate %110, %113 in 1 : vector<2x32xf32>, vector<2x32xf32> -> vector<2x64xf32>
    %cst_40 = arith.constant dense<0.000000e+00> : vector<2x256xf32>
    %124 = tpu.matmul %123, %13, %cst_40 {dimension_numbers = #tpu.dot_dimension_numbers<[1], [0], [0], [1], [0, 0, 1, 1], [], []>} : vector<2x64xf32>, vector<64x256xf32>, vector<2x256xf32> -> vector<2x256xf32>
    %125 = vector.extract_strided_slice %124 {offsets = [0, 0], sizes = [2, 128], strides = [1, 1]} : vector<2x256xf32> to vector<2x128xf32>
    %126 = vector.extract_strided_slice %124 {offsets = [0, 128], sizes = [2, 128], strides = [1, 1]} : vector<2x256xf32> to vector<2x128xf32>
    %127 = arith.index_cast %c2_i32 : i32 to index
    %c0_41 = arith.constant 0 : index
    %c0_42 = arith.constant 0 : index
    %128 = vector.load %arg10[%127, %c0_41, %c0_42] : memref<8x2x128xf32, #tpu.memory_space<vmem>>, vector<1x2x128xf32>
    %129 = vector.shape_cast %128 : vector<1x2x128xf32> to vector<2x128xf32>
    %130 = arith.addf %129, %125 : vector<2x128xf32>
    %c7_i32_43 = arith.constant 7 : i32
    %131 = arith.subi %c7_i32_43, %c2_i32 : i32
    %132 = arith.index_cast %131 : i32 to index
    %c0_44 = arith.constant 0 : index
    %c0_45 = arith.constant 0 : index
    %133 = vector.load %arg11[%132, %c0_44, %c0_45] : memref<8x2x128xf32, #tpu.memory_space<vmem>>, vector<1x2x128xf32>
    %134 = vector.shape_cast %133 : vector<1x2x128xf32> to vector<2x128xf32>
    %135 = arith.addf %134, %126 : vector<2x128xf32>
    %136 = vector.extract_strided_slice %130 {offsets = [0, 0], sizes = [2, 96], strides = [1, 1]} : vector<2x128xf32> to vector<2x96xf32>
    %137 = arith.negf %136 : vector<2x96xf32>
    %138 = math.exp %137 : vector<2x96xf32>
    %cst_46 = arith.constant 1.000000e+00 : f32
    %139 = vector.broadcast %cst_46 : f32 to vector<2x96xf32>
    %140 = arith.addf %139, %138 : vector<2x96xf32>
    %141 = arith.divf %139, %140 : vector<2x96xf32>
    %142 = vector.extract_strided_slice %135 {offsets = [0, 0], sizes = [2, 96], strides = [1, 1]} : vector<2x128xf32> to vector<2x96xf32>
    %143 = arith.negf %142 : vector<2x96xf32>
    %144 = math.exp %143 : vector<2x96xf32>
    %cst_47 = arith.constant 1.000000e+00 : f32
    %145 = vector.broadcast %cst_47 : f32 to vector<2x96xf32>
    %146 = arith.addf %145, %144 : vector<2x96xf32>
    %147 = arith.divf %145, %146 : vector<2x96xf32>
    %148 = vector.extract_strided_slice %130 {offsets = [0, 96], sizes = [2, 32], strides = [1, 1]} : vector<2x128xf32> to vector<2x32xf32>
    %149 = math.tanh %148 : vector<2x32xf32>
    %150 = vector.extract_strided_slice %135 {offsets = [0, 96], sizes = [2, 32], strides = [1, 1]} : vector<2x128xf32> to vector<2x32xf32>
    %151 = math.tanh %150 : vector<2x32xf32>
    %152 = vector.extract_strided_slice %141 {offsets = [0, 32], sizes = [2, 32], strides = [1, 1]} : vector<2x96xf32> to vector<2x32xf32>
    %153 = arith.mulf %152, %102 : vector<2x32xf32>
    %154 = vector.extract_strided_slice %141 {offsets = [0, 0], sizes = [2, 32], strides = [1, 1]} : vector<2x96xf32> to vector<2x32xf32>
    %155 = arith.mulf %154, %149 : vector<2x32xf32>
    %156 = arith.addf %153, %155 : vector<2x32xf32>
    %157 = vector.extract_strided_slice %147 {offsets = [0, 32], sizes = [2, 32], strides = [1, 1]} : vector<2x96xf32> to vector<2x32xf32>
    %158 = arith.mulf %157, %107 : vector<2x32xf32>
    %159 = vector.extract_strided_slice %147 {offsets = [0, 0], sizes = [2, 32], strides = [1, 1]} : vector<2x96xf32> to vector<2x32xf32>
    %160 = arith.mulf %159, %151 : vector<2x32xf32>
    %161 = arith.addf %158, %160 : vector<2x32xf32>
    %162 = vector.extract_strided_slice %141 {offsets = [0, 64], sizes = [2, 32], strides = [1, 1]} : vector<2x96xf32> to vector<2x32xf32>
    %163 = math.tanh %156 : vector<2x32xf32>
    %164 = arith.mulf %162, %163 : vector<2x32xf32>
    %165 = vector.extract_strided_slice %147 {offsets = [0, 64], sizes = [2, 32], strides = [1, 1]} : vector<2x96xf32> to vector<2x32xf32>
    %166 = math.tanh %161 : vector<2x32xf32>
    %167 = arith.mulf %165, %166 : vector<2x32xf32>
    %168 = arith.index_cast %c2_i32 : i32 to index
    %c0_48 = arith.constant 0 : index
    %c0_49 = arith.constant 0 : index
    %169 = vector.load %arg12[%168, %c0_48, %c0_49] : memref<8x2x32xf32, #tpu.memory_space<vmem>>, vector<1x2x32xf32>
    %170 = vector.shape_cast %169 : vector<1x2x32xf32> to vector<2x32xf32>
    %171 = vector.shape_cast %164 : vector<2x32xf32> to vector<1x2x32xf32>
    tpu.vector_store %arg12[%168, %c0_48, %c0_49], %171 {strides = array<i32>} : memref<8x2x32xf32, #tpu.memory_space<vmem>>, vector<1x2x32xf32>,
    %c7_i32_50 = arith.constant 7 : i32
    %172 = arith.subi %c7_i32_50, %c2_i32 : i32
    %173 = arith.index_cast %172 : i32 to index
    %c0_51 = arith.constant 0 : index
    %c0_52 = arith.constant 0 : index
    %174 = vector.load %arg13[%173, %c0_51, %c0_52] : memref<8x2x32xf32, #tpu.memory_space<vmem>>, vector<1x2x32xf32>
    %175 = vector.shape_cast %174 : vector<1x2x32xf32> to vector<2x32xf32>
    %176 = vector.shape_cast %167 : vector<2x32xf32> to vector<1x2x32xf32>
    tpu.vector_store %arg13[%173, %c0_51, %c0_52], %176 {strides = array<i32>} : memref<8x2x32xf32, #tpu.memory_space<vmem>>, vector<1x2x32xf32>,
    %c3_i32 = arith.constant 3 : i32
    %177 = tpu.concatenate %164, %167 in 1 : vector<2x32xf32>, vector<2x32xf32> -> vector<2x64xf32>
    %cst_53 = arith.constant dense<0.000000e+00> : vector<2x256xf32>
    %178 = tpu.matmul %177, %13, %cst_53 {dimension_numbers = #tpu.dot_dimension_numbers<[1], [0], [0], [1], [0, 0, 1, 1], [], []>} : vector<2x64xf32>, vector<64x256xf32>, vector<2x256xf32> -> vector<2x256xf32>
    %179 = vector.extract_strided_slice %178 {offsets = [0, 0], sizes = [2, 128], strides = [1, 1]} : vector<2x256xf32> to vector<2x128xf32>
    %180 = vector.extract_strided_slice %178 {offsets = [0, 128], sizes = [2, 128], strides = [1, 1]} : vector<2x256xf32> to vector<2x128xf32>
    %181 = arith.index_cast %c3_i32 : i32 to index
    %c0_54 = arith.constant 0 : index
    %c0_55 = arith.constant 0 : index
    %182 = vector.load %arg10[%181, %c0_54, %c0_55] : memref<8x2x128xf32, #tpu.memory_space<vmem>>, vector<1x2x128xf32>
    %183 = vector.shape_cast %182 : vector<1x2x128xf32> to vector<2x128xf32>
    %184 = arith.addf %183, %179 : vector<2x128xf32>
    %c7_i32_56 = arith.constant 7 : i32
    %185 = arith.subi %c7_i32_56, %c3_i32 : i32
    %186 = arith.index_cast %185 : i32 to index
    %c0_57 = arith.constant 0 : index
    %c0_58 = arith.constant 0 : index
    %187 = vector.load %arg11[%186, %c0_57, %c0_58] : memref<8x2x128xf32, #tpu.memory_space<vmem>>, vector<1x2x128xf32>
    %188 = vector.shape_cast %187 : vector<1x2x128xf32> to vector<2x128xf32>
    %189 = arith.addf %188, %180 : vector<2x128xf32>
    %190 = vector.extract_strided_slice %184 {offsets = [0, 0], sizes = [2, 96], strides = [1, 1]} : vector<2x128xf32> to vector<2x96xf32>
    %191 = arith.negf %190 : vector<2x96xf32>
    %192 = math.exp %191 : vector<2x96xf32>
    %cst_59 = arith.constant 1.000000e+00 : f32
    %193 = vector.broadcast %cst_59 : f32 to vector<2x96xf32>
    %194 = arith.addf %193, %192 : vector<2x96xf32>
    %195 = arith.divf %193, %194 : vector<2x96xf32>
    %196 = vector.extract_strided_slice %189 {offsets = [0, 0], sizes = [2, 96], strides = [1, 1]} : vector<2x128xf32> to vector<2x96xf32>
    %197 = arith.negf %196 : vector<2x96xf32>
    %198 = math.exp %197 : vector<2x96xf32>
    %cst_60 = arith.constant 1.000000e+00 : f32
    %199 = vector.broadcast %cst_60 : f32 to vector<2x96xf32>
    %200 = arith.addf %199, %198 : vector<2x96xf32>
    %201 = arith.divf %199, %200 : vector<2x96xf32>
    %202 = vector.extract_strided_slice %184 {offsets = [0, 96], sizes = [2, 32], strides = [1, 1]} : vector<2x128xf32> to vector<2x32xf32>
    %203 = math.tanh %202 : vector<2x32xf32>
    %204 = vector.extract_strided_slice %189 {offsets = [0, 96], sizes = [2, 32], strides = [1, 1]} : vector<2x128xf32> to vector<2x32xf32>
    %205 = math.tanh %204 : vector<2x32xf32>
    %206 = vector.extract_strided_slice %195 {offsets = [0, 32], sizes = [2, 32], strides = [1, 1]} : vector<2x96xf32> to vector<2x32xf32>
    %207 = arith.mulf %206, %156 : vector<2x32xf32>
    %208 = vector.extract_strided_slice %195 {offsets = [0, 0], sizes = [2, 32], strides = [1, 1]} : vector<2x96xf32> to vector<2x32xf32>
    %209 = arith.mulf %208, %203 : vector<2x32xf32>
    %210 = arith.addf %207, %209 : vector<2x32xf32>
    %211 = vector.extract_strided_slice %201 {offsets = [0, 32], sizes = [2, 32], strides = [1, 1]} : vector<2x96xf32> to vector<2x32xf32>
    %212 = arith.mulf %211, %161 : vector<2x32xf32>
    %213 = vector.extract_strided_slice %201 {offsets = [0, 0], sizes = [2, 32], strides = [1, 1]} : vector<2x96xf32> to vector<2x32xf32>
    %214 = arith.mulf %213, %205 : vector<2x32xf32>
    %215 = arith.addf %212, %214 : vector<2x32xf32>
    %216 = vector.extract_strided_slice %195 {offsets = [0, 64], sizes = [2, 32], strides = [1, 1]} : vector<2x96xf32> to vector<2x32xf32>
    %217 = math.tanh %210 : vector<2x32xf32>
    %218 = arith.mulf %216, %217 : vector<2x32xf32>
    %219 = vector.extract_strided_slice %201 {offsets = [0, 64], sizes = [2, 32], strides = [1, 1]} : vector<2x96xf32> to vector<2x32xf32>
    %220 = math.tanh %215 : vector<2x32xf32>
    %221 = arith.mulf %219, %220 : vector<2x32xf32>
    %222 = arith.index_cast %c3_i32 : i32 to index
    %c0_61 = arith.constant 0 : index
    %c0_62 = arith.constant 0 : index
    %223 = vector.load %arg12[%222, %c0_61, %c0_62] : memref<8x2x32xf32, #tpu.memory_space<vmem>>, vector<1x2x32xf32>
    %224 = vector.shape_cast %223 : vector<1x2x32xf32> to vector<2x32xf32>
    %225 = vector.shape_cast %218 : vector<2x32xf32> to vector<1x2x32xf32>
    tpu.vector_store %arg12[%222, %c0_61, %c0_62], %225 {strides = array<i32>} : memref<8x2x32xf32, #tpu.memory_space<vmem>>, vector<1x2x32xf32>,
    %c7_i32_63 = arith.constant 7 : i32
    %226 = arith.subi %c7_i32_63, %c3_i32 : i32
    %227 = arith.index_cast %226 : i32 to index
    %c0_64 = arith.constant 0 : index
    %c0_65 = arith.constant 0 : index
    %228 = vector.load %arg13[%227, %c0_64, %c0_65] : memref<8x2x32xf32, #tpu.memory_space<vmem>>, vector<1x2x32xf32>
    %229 = vector.shape_cast %228 : vector<1x2x32xf32> to vector<2x32xf32>
    %230 = vector.shape_cast %221 : vector<2x32xf32> to vector<1x2x32xf32>
    tpu.vector_store %arg13[%227, %c0_64, %c0_65], %230 {strides = array<i32>} : memref<8x2x32xf32, #tpu.memory_space<vmem>>, vector<1x2x32xf32>,
    %c4_i32 = arith.constant 4 : i32
    %231 = tpu.concatenate %218, %221 in 1 : vector<2x32xf32>, vector<2x32xf32> -> vector<2x64xf32>
    %cst_66 = arith.constant dense<0.000000e+00> : vector<2x256xf32>
    %232 = tpu.matmul %231, %13, %cst_66 {dimension_numbers = #tpu.dot_dimension_numbers<[1], [0], [0], [1], [0, 0, 1, 1], [], []>} : vector<2x64xf32>, vector<64x256xf32>, vector<2x256xf32> -> vector<2x256xf32>
    %233 = vector.extract_strided_slice %232 {offsets = [0, 0], sizes = [2, 128], strides = [1, 1]} : vector<2x256xf32> to vector<2x128xf32>
    %234 = vector.extract_strided_slice %232 {offsets = [0, 128], sizes = [2, 128], strides = [1, 1]} : vector<2x256xf32> to vector<2x128xf32>
    %235 = arith.index_cast %c4_i32 : i32 to index
    %c0_67 = arith.constant 0 : index
    %c0_68 = arith.constant 0 : index
    %236 = vector.load %arg10[%235, %c0_67, %c0_68] : memref<8x2x128xf32, #tpu.memory_space<vmem>>, vector<1x2x128xf32>
    %237 = vector.shape_cast %236 : vector<1x2x128xf32> to vector<2x128xf32>
    %238 = arith.addf %237, %233 : vector<2x128xf32>
    %c7_i32_69 = arith.constant 7 : i32
    %239 = arith.subi %c7_i32_69, %c4_i32 : i32
    %240 = arith.index_cast %239 : i32 to index
    %c0_70 = arith.constant 0 : index
    %c0_71 = arith.constant 0 : index
    %241 = vector.load %arg11[%240, %c0_70, %c0_71] : memref<8x2x128xf32, #tpu.memory_space<vmem>>, vector<1x2x128xf32>
    %242 = vector.shape_cast %241 : vector<1x2x128xf32> to vector<2x128xf32>
    %243 = arith.addf %242, %234 : vector<2x128xf32>
    %244 = vector.extract_strided_slice %238 {offsets = [0, 0], sizes = [2, 96], strides = [1, 1]} : vector<2x128xf32> to vector<2x96xf32>
    %245 = arith.negf %244 : vector<2x96xf32>
    %246 = math.exp %245 : vector<2x96xf32>
    %cst_72 = arith.constant 1.000000e+00 : f32
    %247 = vector.broadcast %cst_72 : f32 to vector<2x96xf32>
    %248 = arith.addf %247, %246 : vector<2x96xf32>
    %249 = arith.divf %247, %248 : vector<2x96xf32>
    %250 = vector.extract_strided_slice %243 {offsets = [0, 0], sizes = [2, 96], strides = [1, 1]} : vector<2x128xf32> to vector<2x96xf32>
    %251 = arith.negf %250 : vector<2x96xf32>
    %252 = math.exp %251 : vector<2x96xf32>
    %cst_73 = arith.constant 1.000000e+00 : f32
    %253 = vector.broadcast %cst_73 : f32 to vector<2x96xf32>
    %254 = arith.addf %253, %252 : vector<2x96xf32>
    %255 = arith.divf %253, %254 : vector<2x96xf32>
    %256 = vector.extract_strided_slice %238 {offsets = [0, 96], sizes = [2, 32], strides = [1, 1]} : vector<2x128xf32> to vector<2x32xf32>
    %257 = math.tanh %256 : vector<2x32xf32>
    %258 = vector.extract_strided_slice %243 {offsets = [0, 96], sizes = [2, 32], strides = [1, 1]} : vector<2x128xf32> to vector<2x32xf32>
    %259 = math.tanh %258 : vector<2x32xf32>
    %260 = vector.extract_strided_slice %249 {offsets = [0, 32], sizes = [2, 32], strides = [1, 1]} : vector<2x96xf32> to vector<2x32xf32>
    %261 = arith.mulf %260, %210 : vector<2x32xf32>
    %262 = vector.extract_strided_slice %249 {offsets = [0, 0], sizes = [2, 32], strides = [1, 1]} : vector<2x96xf32> to vector<2x32xf32>
    %263 = arith.mulf %262, %257 : vector<2x32xf32>
    %264 = arith.addf %261, %263 : vector<2x32xf32>
    %265 = vector.extract_strided_slice %255 {offsets = [0, 32], sizes = [2, 32], strides = [1, 1]} : vector<2x96xf32> to vector<2x32xf32>
    %266 = arith.mulf %265, %215 : vector<2x32xf32>
    %267 = vector.extract_strided_slice %255 {offsets = [0, 0], sizes = [2, 32], strides = [1, 1]} : vector<2x96xf32> to vector<2x32xf32>
    %268 = arith.mulf %267, %259 : vector<2x32xf32>
    %269 = arith.addf %266, %268 : vector<2x32xf32>
    %270 = vector.extract_strided_slice %249 {offsets = [0, 64], sizes = [2, 32], strides = [1, 1]} : vector<2x96xf32> to vector<2x32xf32>
    %271 = math.tanh %264 : vector<2x32xf32>
    %272 = arith.mulf %270, %271 : vector<2x32xf32>
    %273 = vector.extract_strided_slice %255 {offsets = [0, 64], sizes = [2, 32], strides = [1, 1]} : vector<2x96xf32> to vector<2x32xf32>
    %274 = math.tanh %269 : vector<2x32xf32>
    %275 = arith.mulf %273, %274 : vector<2x32xf32>
    %276 = arith.index_cast %c4_i32 : i32 to index
    %c0_74 = arith.constant 0 : index
    %c0_75 = arith.constant 0 : index
    %277 = vector.load %arg12[%276, %c0_74, %c0_75] : memref<8x2x32xf32, #tpu.memory_space<vmem>>, vector<1x2x32xf32>
    %278 = vector.shape_cast %277 : vector<1x2x32xf32> to vector<2x32xf32>
    %279 = vector.shape_cast %272 : vector<2x32xf32> to vector<1x2x32xf32>
    tpu.vector_store %arg12[%276, %c0_74, %c0_75], %279 {strides = array<i32>} : memref<8x2x32xf32, #tpu.memory_space<vmem>>, vector<1x2x32xf32>,
    %c7_i32_76 = arith.constant 7 : i32
    %280 = arith.subi %c7_i32_76, %c4_i32 : i32
    %281 = arith.index_cast %280 : i32 to index
    %c0_77 = arith.constant 0 : index
    %c0_78 = arith.constant 0 : index
    %282 = vector.load %arg13[%281, %c0_77, %c0_78] : memref<8x2x32xf32, #tpu.memory_space<vmem>>, vector<1x2x32xf32>
    %283 = vector.shape_cast %282 : vector<1x2x32xf32> to vector<2x32xf32>
    %284 = vector.shape_cast %275 : vector<2x32xf32> to vector<1x2x32xf32>
    tpu.vector_store %arg13[%281, %c0_77, %c0_78], %284 {strides = array<i32>} : memref<8x2x32xf32, #tpu.memory_space<vmem>>, vector<1x2x32xf32>,
    %c5_i32 = arith.constant 5 : i32
    %285 = tpu.concatenate %272, %275 in 1 : vector<2x32xf32>, vector<2x32xf32> -> vector<2x64xf32>
    %cst_79 = arith.constant dense<0.000000e+00> : vector<2x256xf32>
    %286 = tpu.matmul %285, %13, %cst_79 {dimension_numbers = #tpu.dot_dimension_numbers<[1], [0], [0], [1], [0, 0, 1, 1], [], []>} : vector<2x64xf32>, vector<64x256xf32>, vector<2x256xf32> -> vector<2x256xf32>
    %287 = vector.extract_strided_slice %286 {offsets = [0, 0], sizes = [2, 128], strides = [1, 1]} : vector<2x256xf32> to vector<2x128xf32>
    %288 = vector.extract_strided_slice %286 {offsets = [0, 128], sizes = [2, 128], strides = [1, 1]} : vector<2x256xf32> to vector<2x128xf32>
    %289 = arith.index_cast %c5_i32 : i32 to index
    %c0_80 = arith.constant 0 : index
    %c0_81 = arith.constant 0 : index
    %290 = vector.load %arg10[%289, %c0_80, %c0_81] : memref<8x2x128xf32, #tpu.memory_space<vmem>>, vector<1x2x128xf32>
    %291 = vector.shape_cast %290 : vector<1x2x128xf32> to vector<2x128xf32>
    %292 = arith.addf %291, %287 : vector<2x128xf32>
    %c7_i32_82 = arith.constant 7 : i32
    %293 = arith.subi %c7_i32_82, %c5_i32 : i32
    %294 = arith.index_cast %293 : i32 to index
    %c0_83 = arith.constant 0 : index
    %c0_84 = arith.constant 0 : index
    %295 = vector.load %arg11[%294, %c0_83, %c0_84] : memref<8x2x128xf32, #tpu.memory_space<vmem>>, vector<1x2x128xf32>
    %296 = vector.shape_cast %295 : vector<1x2x128xf32> to vector<2x128xf32>
    %297 = arith.addf %296, %288 : vector<2x128xf32>
    %298 = vector.extract_strided_slice %292 {offsets = [0, 0], sizes = [2, 96], strides = [1, 1]} : vector<2x128xf32> to vector<2x96xf32>
    %299 = arith.negf %298 : vector<2x96xf32>
    %300 = math.exp %299 : vector<2x96xf32>
    %cst_85 = arith.constant 1.000000e+00 : f32
    %301 = vector.broadcast %cst_85 : f32 to vector<2x96xf32>
    %302 = arith.addf %301, %300 : vector<2x96xf32>
    %303 = arith.divf %301, %302 : vector<2x96xf32>
    %304 = vector.extract_strided_slice %297 {offsets = [0, 0], sizes = [2, 96], strides = [1, 1]} : vector<2x128xf32> to vector<2x96xf32>
    %305 = arith.negf %304 : vector<2x96xf32>
    %306 = math.exp %305 : vector<2x96xf32>
    %cst_86 = arith.constant 1.000000e+00 : f32
    %307 = vector.broadcast %cst_86 : f32 to vector<2x96xf32>
    %308 = arith.addf %307, %306 : vector<2x96xf32>
    %309 = arith.divf %307, %308 : vector<2x96xf32>
    %310 = vector.extract_strided_slice %292 {offsets = [0, 96], sizes = [2, 32], strides = [1, 1]} : vector<2x128xf32> to vector<2x32xf32>
    %311 = math.tanh %310 : vector<2x32xf32>
    %312 = vector.extract_strided_slice %297 {offsets = [0, 96], sizes = [2, 32], strides = [1, 1]} : vector<2x128xf32> to vector<2x32xf32>
    %313 = math.tanh %312 : vector<2x32xf32>
    %314 = vector.extract_strided_slice %303 {offsets = [0, 32], sizes = [2, 32], strides = [1, 1]} : vector<2x96xf32> to vector<2x32xf32>
    %315 = arith.mulf %314, %264 : vector<2x32xf32>
    %316 = vector.extract_strided_slice %303 {offsets = [0, 0], sizes = [2, 32], strides = [1, 1]} : vector<2x96xf32> to vector<2x32xf32>
    %317 = arith.mulf %316, %311 : vector<2x32xf32>
    %318 = arith.addf %315, %317 : vector<2x32xf32>
    %319 = vector.extract_strided_slice %309 {offsets = [0, 32], sizes = [2, 32], strides = [1, 1]} : vector<2x96xf32> to vector<2x32xf32>
    %320 = arith.mulf %319, %269 : vector<2x32xf32>
    %321 = vector.extract_strided_slice %309 {offsets = [0, 0], sizes = [2, 32], strides = [1, 1]} : vector<2x96xf32> to vector<2x32xf32>
    %322 = arith.mulf %321, %313 : vector<2x32xf32>
    %323 = arith.addf %320, %322 : vector<2x32xf32>
    %324 = vector.extract_strided_slice %303 {offsets = [0, 64], sizes = [2, 32], strides = [1, 1]} : vector<2x96xf32> to vector<2x32xf32>
    %325 = math.tanh %318 : vector<2x32xf32>
    %326 = arith.mulf %324, %325 : vector<2x32xf32>
    %327 = vector.extract_strided_slice %309 {offsets = [0, 64], sizes = [2, 32], strides = [1, 1]} : vector<2x96xf32> to vector<2x32xf32>
    %328 = math.tanh %323 : vector<2x32xf32>
    %329 = arith.mulf %327, %328 : vector<2x32xf32>
    %330 = arith.index_cast %c5_i32 : i32 to index
    %c0_87 = arith.constant 0 : index
    %c0_88 = arith.constant 0 : index
    %331 = vector.load %arg12[%330, %c0_87, %c0_88] : memref<8x2x32xf32, #tpu.memory_space<vmem>>, vector<1x2x32xf32>
    %332 = vector.shape_cast %331 : vector<1x2x32xf32> to vector<2x32xf32>
    %333 = vector.shape_cast %326 : vector<2x32xf32> to vector<1x2x32xf32>
    tpu.vector_store %arg12[%330, %c0_87, %c0_88], %333 {strides = array<i32>} : memref<8x2x32xf32, #tpu.memory_space<vmem>>, vector<1x2x32xf32>,
    %c7_i32_89 = arith.constant 7 : i32
    %334 = arith.subi %c7_i32_89, %c5_i32 : i32
    %335 = arith.index_cast %334 : i32 to index
    %c0_90 = arith.constant 0 : index
    %c0_91 = arith.constant 0 : index
    %336 = vector.load %arg13[%335, %c0_90, %c0_91] : memref<8x2x32xf32, #tpu.memory_space<vmem>>, vector<1x2x32xf32>
    %337 = vector.shape_cast %336 : vector<1x2x32xf32> to vector<2x32xf32>
    %338 = vector.shape_cast %329 : vector<2x32xf32> to vector<1x2x32xf32>
    tpu.vector_store %arg13[%335, %c0_90, %c0_91], %338 {strides = array<i32>} : memref<8x2x32xf32, #tpu.memory_space<vmem>>, vector<1x2x32xf32>,
    %c6_i32 = arith.constant 6 : i32
    %339 = tpu.concatenate %326, %329 in 1 : vector<2x32xf32>, vector<2x32xf32> -> vector<2x64xf32>
    %cst_92 = arith.constant dense<0.000000e+00> : vector<2x256xf32>
    %340 = tpu.matmul %339, %13, %cst_92 {dimension_numbers = #tpu.dot_dimension_numbers<[1], [0], [0], [1], [0, 0, 1, 1], [], []>} : vector<2x64xf32>, vector<64x256xf32>, vector<2x256xf32> -> vector<2x256xf32>
    %341 = vector.extract_strided_slice %340 {offsets = [0, 0], sizes = [2, 128], strides = [1, 1]} : vector<2x256xf32> to vector<2x128xf32>
    %342 = vector.extract_strided_slice %340 {offsets = [0, 128], sizes = [2, 128], strides = [1, 1]} : vector<2x256xf32> to vector<2x128xf32>
    %343 = arith.index_cast %c6_i32 : i32 to index
    %c0_93 = arith.constant 0 : index
    %c0_94 = arith.constant 0 : index
    %344 = vector.load %arg10[%343, %c0_93, %c0_94] : memref<8x2x128xf32, #tpu.memory_space<vmem>>, vector<1x2x128xf32>
    %345 = vector.shape_cast %344 : vector<1x2x128xf32> to vector<2x128xf32>
    %346 = arith.addf %345, %341 : vector<2x128xf32>
    %c7_i32_95 = arith.constant 7 : i32
    %347 = arith.subi %c7_i32_95, %c6_i32 : i32
    %348 = arith.index_cast %347 : i32 to index
    %c0_96 = arith.constant 0 : index
    %c0_97 = arith.constant 0 : index
    %349 = vector.load %arg11[%348, %c0_96, %c0_97] : memref<8x2x128xf32, #tpu.memory_space<vmem>>, vector<1x2x128xf32>
    %350 = vector.shape_cast %349 : vector<1x2x128xf32> to vector<2x128xf32>
    %351 = arith.addf %350, %342 : vector<2x128xf32>
    %352 = vector.extract_strided_slice %346 {offsets = [0, 0], sizes = [2, 96], strides = [1, 1]} : vector<2x128xf32> to vector<2x96xf32>
    %353 = arith.negf %352 : vector<2x96xf32>
    %354 = math.exp %353 : vector<2x96xf32>
    %cst_98 = arith.constant 1.000000e+00 : f32
    %355 = vector.broadcast %cst_98 : f32 to vector<2x96xf32>
    %356 = arith.addf %355, %354 : vector<2x96xf32>
    %357 = arith.divf %355, %356 : vector<2x96xf32>
    %358 = vector.extract_strided_slice %351 {offsets = [0, 0], sizes = [2, 96], strides = [1, 1]} : vector<2x128xf32> to vector<2x96xf32>
    %359 = arith.negf %358 : vector<2x96xf32>
    %360 = math.exp %359 : vector<2x96xf32>
    %cst_99 = arith.constant 1.000000e+00 : f32
    %361 = vector.broadcast %cst_99 : f32 to vector<2x96xf32>
    %362 = arith.addf %361, %360 : vector<2x96xf32>
    %363 = arith.divf %361, %362 : vector<2x96xf32>
    %364 = vector.extract_strided_slice %346 {offsets = [0, 96], sizes = [2, 32], strides = [1, 1]} : vector<2x128xf32> to vector<2x32xf32>
    %365 = math.tanh %364 : vector<2x32xf32>
    %366 = vector.extract_strided_slice %351 {offsets = [0, 96], sizes = [2, 32], strides = [1, 1]} : vector<2x128xf32> to vector<2x32xf32>
    %367 = math.tanh %366 : vector<2x32xf32>
    %368 = vector.extract_strided_slice %357 {offsets = [0, 32], sizes = [2, 32], strides = [1, 1]} : vector<2x96xf32> to vector<2x32xf32>
    %369 = arith.mulf %368, %318 : vector<2x32xf32>
    %370 = vector.extract_strided_slice %357 {offsets = [0, 0], sizes = [2, 32], strides = [1, 1]} : vector<2x96xf32> to vector<2x32xf32>
    %371 = arith.mulf %370, %365 : vector<2x32xf32>
    %372 = arith.addf %369, %371 : vector<2x32xf32>
    %373 = vector.extract_strided_slice %363 {offsets = [0, 32], sizes = [2, 32], strides = [1, 1]} : vector<2x96xf32> to vector<2x32xf32>
    %374 = arith.mulf %373, %323 : vector<2x32xf32>
    %375 = vector.extract_strided_slice %363 {offsets = [0, 0], sizes = [2, 32], strides = [1, 1]} : vector<2x96xf32> to vector<2x32xf32>
    %376 = arith.mulf %375, %367 : vector<2x32xf32>
    %377 = arith.addf %374, %376 : vector<2x32xf32>
    %378 = vector.extract_strided_slice %357 {offsets = [0, 64], sizes = [2, 32], strides = [1, 1]} : vector<2x96xf32> to vector<2x32xf32>
    %379 = math.tanh %372 : vector<2x32xf32>
    %380 = arith.mulf %378, %379 : vector<2x32xf32>
    %381 = vector.extract_strided_slice %363 {offsets = [0, 64], sizes = [2, 32], strides = [1, 1]} : vector<2x96xf32> to vector<2x32xf32>
    %382 = math.tanh %377 : vector<2x32xf32>
    %383 = arith.mulf %381, %382 : vector<2x32xf32>
    %384 = arith.index_cast %c6_i32 : i32 to index
    %c0_100 = arith.constant 0 : index
    %c0_101 = arith.constant 0 : index
    %385 = vector.load %arg12[%384, %c0_100, %c0_101] : memref<8x2x32xf32, #tpu.memory_space<vmem>>, vector<1x2x32xf32>
    %386 = vector.shape_cast %385 : vector<1x2x32xf32> to vector<2x32xf32>
    %387 = vector.shape_cast %380 : vector<2x32xf32> to vector<1x2x32xf32>
    tpu.vector_store %arg12[%384, %c0_100, %c0_101], %387 {strides = array<i32>} : memref<8x2x32xf32, #tpu.memory_space<vmem>>, vector<1x2x32xf32>,
    %c7_i32_102 = arith.constant 7 : i32
    %388 = arith.subi %c7_i32_102, %c6_i32 : i32
    %389 = arith.index_cast %388 : i32 to index
    %c0_103 = arith.constant 0 : index
    %c0_104 = arith.constant 0 : index
    %390 = vector.load %arg13[%389, %c0_103, %c0_104] : memref<8x2x32xf32, #tpu.memory_space<vmem>>, vector<1x2x32xf32>
    %391 = vector.shape_cast %390 : vector<1x2x32xf32> to vector<2x32xf32>
    %392 = vector.shape_cast %383 : vector<2x32xf32> to vector<1x2x32xf32>
    tpu.vector_store %arg13[%389, %c0_103, %c0_104], %392 {strides = array<i32>} : memref<8x2x32xf32, #tpu.memory_space<vmem>>, vector<1x2x32xf32>,
    %c7_i32_105 = arith.constant 7 : i32
    %393 = tpu.concatenate %380, %383 in 1 : vector<2x32xf32>, vector<2x32xf32> -> vector<2x64xf32>
    %cst_106 = arith.constant dense<0.000000e+00> : vector<2x256xf32>
    %394 = tpu.matmul %393, %13, %cst_106 {dimension_numbers = #tpu.dot_dimension_numbers<[1], [0], [0], [1], [0, 0, 1, 1], [], []>} : vector<2x64xf32>, vector<64x256xf32>, vector<2x256xf32> -> vector<2x256xf32>
    %395 = vector.extract_strided_slice %394 {offsets = [0, 0], sizes = [2, 128], strides = [1, 1]} : vector<2x256xf32> to vector<2x128xf32>
    %396 = vector.extract_strided_slice %394 {offsets = [0, 128], sizes = [2, 128], strides = [1, 1]} : vector<2x256xf32> to vector<2x128xf32>
    %397 = arith.index_cast %c7_i32_105 : i32 to index
    %c0_107 = arith.constant 0 : index
    %c0_108 = arith.constant 0 : index
    %398 = vector.load %arg10[%397, %c0_107, %c0_108] : memref<8x2x128xf32, #tpu.memory_space<vmem>>, vector<1x2x128xf32>
    %399 = vector.shape_cast %398 : vector<1x2x128xf32> to vector<2x128xf32>
    %400 = arith.addf %399, %395 : vector<2x128xf32>
    %c7_i32_109 = arith.constant 7 : i32
    %401 = arith.subi %c7_i32_109, %c7_i32_105 : i32
    %402 = arith.index_cast %401 : i32 to index
    %c0_110 = arith.constant 0 : index
    %c0_111 = arith.constant 0 : index
    %403 = vector.load %arg11[%402, %c0_110, %c0_111] : memref<8x2x128xf32, #tpu.memory_space<vmem>>, vector<1x2x128xf32>
    %404 = vector.shape_cast %403 : vector<1x2x128xf32> to vector<2x128xf32>
    %405 = arith.addf %404, %396 : vector<2x128xf32>
    %406 = vector.extract_strided_slice %400 {offsets = [0, 0], sizes = [2, 96], strides = [1, 1]} : vector<2x128xf32> to vector<2x96xf32>
    %407 = arith.negf %406 : vector<2x96xf32>
    %408 = math.exp %407 : vector<2x96xf32>
    %cst_112 = arith.constant 1.000000e+00 : f32
    %409 = vector.broadcast %cst_112 : f32 to vector<2x96xf32>
    %410 = arith.addf %409, %408 : vector<2x96xf32>
    %411 = arith.divf %409, %410 : vector<2x96xf32>
    %412 = vector.extract_strided_slice %405 {offsets = [0, 0], sizes = [2, 96], strides = [1, 1]} : vector<2x128xf32> to vector<2x96xf32>
    %413 = arith.negf %412 : vector<2x96xf32>
    %414 = math.exp %413 : vector<2x96xf32>
    %cst_113 = arith.constant 1.000000e+00 : f32
    %415 = vector.broadcast %cst_113 : f32 to vector<2x96xf32>
    %416 = arith.addf %415, %414 : vector<2x96xf32>
    %417 = arith.divf %415, %416 : vector<2x96xf32>
    %418 = vector.extract_strided_slice %400 {offsets = [0, 96], sizes = [2, 32], strides = [1, 1]} : vector<2x128xf32> to vector<2x32xf32>
    %419 = math.tanh %418 : vector<2x32xf32>
    %420 = vector.extract_strided_slice %405 {offsets = [0, 96], sizes = [2, 32], strides = [1, 1]} : vector<2x128xf32> to vector<2x32xf32>
    %421 = math.tanh %420 : vector<2x32xf32>
    %422 = vector.extract_strided_slice %411 {offsets = [0, 32], sizes = [2, 32], strides = [1, 1]} : vector<2x96xf32> to vector<2x32xf32>
    %423 = arith.mulf %422, %372 : vector<2x32xf32>
    %424 = vector.extract_strided_slice %411 {offsets = [0, 0], sizes = [2, 32], strides = [1, 1]} : vector<2x96xf32> to vector<2x32xf32>
    %425 = arith.mulf %424, %419 : vector<2x32xf32>
    %426 = arith.addf %423, %425 : vector<2x32xf32>
    %427 = vector.extract_strided_slice %417 {offsets = [0, 32], sizes = [2, 32], strides = [1, 1]} : vector<2x96xf32> to vector<2x32xf32>
    %428 = arith.mulf %427, %377 : vector<2x32xf32>
    %429 = vector.extract_strided_slice %417 {offsets = [0, 0], sizes = [2, 32], strides = [1, 1]} : vector<2x96xf32> to vector<2x32xf32>
    %430 = arith.mulf %429, %421 : vector<2x32xf32>
    %431 = arith.addf %428, %430 : vector<2x32xf32>
    %432 = vector.extract_strided_slice %411 {offsets = [0, 64], sizes = [2, 32], strides = [1, 1]} : vector<2x96xf32> to vector<2x32xf32>
    %433 = math.tanh %426 : vector<2x32xf32>
    %434 = arith.mulf %432, %433 : vector<2x32xf32>
    %435 = vector.extract_strided_slice %417 {offsets = [0, 64], sizes = [2, 32], strides = [1, 1]} : vector<2x96xf32> to vector<2x32xf32>
    %436 = math.tanh %431 : vector<2x32xf32>
    %437 = arith.mulf %435, %436 : vector<2x32xf32>
    %438 = arith.index_cast %c7_i32_105 : i32 to index
    %c0_114 = arith.constant 0 : index
    %c0_115 = arith.constant 0 : index
    %439 = vector.load %arg12[%438, %c0_114, %c0_115] : memref<8x2x32xf32, #tpu.memory_space<vmem>>, vector<1x2x32xf32>
    %440 = vector.shape_cast %439 : vector<1x2x32xf32> to vector<2x32xf32>
    %441 = vector.shape_cast %434 : vector<2x32xf32> to vector<1x2x32xf32>
    tpu.vector_store %arg12[%438, %c0_114, %c0_115], %441 {strides = array<i32>} : memref<8x2x32xf32, #tpu.memory_space<vmem>>, vector<1x2x32xf32>,
    %c7_i32_116 = arith.constant 7 : i32
    %442 = arith.subi %c7_i32_116, %c7_i32_105 : i32
    %443 = arith.index_cast %442 : i32 to index
    %c0_117 = arith.constant 0 : index
    %c0_118 = arith.constant 0 : index
    %444 = vector.load %arg13[%443, %c0_117, %c0_118] : memref<8x2x32xf32, #tpu.memory_space<vmem>>, vector<1x2x32xf32>
    %445 = vector.shape_cast %444 : vector<1x2x32xf32> to vector<2x32xf32>
    %446 = vector.shape_cast %437 : vector<2x32xf32> to vector<1x2x32xf32>
    tpu.vector_store %arg13[%443, %c0_117, %c0_118], %446 {strides = array<i32>} : memref<8x2x32xf32, #tpu.memory_space<vmem>>, vector<1x2x32xf32>,
    %c8_i32 = arith.constant 8 : i32
    %c0_119 = arith.constant 0 : index
    %c0_120 = arith.constant 0 : index
    %447 = vector.load %arg4[%c0_119, %c0_120] : memref<64x8xf32, #tpu.memory_space<vmem>>, vector<64x8xf32>
    %c0_121 = arith.constant 0 : index
    %c0_122 = arith.constant 0 : index
    %c0_123 = arith.constant 0 : index
    %448 = vector.load %arg12[%c0_121, %c0_122, %c0_123] : memref<8x2x32xf32, #tpu.memory_space<vmem>>, vector<8x2x32xf32>
    %449 = vector.shape_cast %448 : vector<8x2x32xf32> to vector<16x32xf32>
    %450 = vector.extract_strided_slice %447 {offsets = [0, 0], sizes = [32, 8], strides = [1, 1]} : vector<64x8xf32> to vector<32x8xf32>
    %cst_124 = arith.constant dense<0.000000e+00> : vector<16x8xf32>
    %451 = tpu.matmul %449, %450, %cst_124 {dimension_numbers = #tpu.dot_dimension_numbers<[1], [0], [0], [1], [0, 0, 1, 1], [], []>} : vector<16x32xf32>, vector<32x8xf32>, vector<16x8xf32> -> vector<16x8xf32>
    %c0_125 = arith.constant 0 : index
    %c0_126 = arith.constant 0 : index
    %c0_127 = arith.constant 0 : index
    %452 = vector.load %arg13[%c0_125, %c0_126, %c0_127] : memref<8x2x32xf32, #tpu.memory_space<vmem>>, vector<8x2x32xf32>
    %453 = vector.shape_cast %452 : vector<8x2x32xf32> to vector<16x32xf32>
    %454 = vector.extract_strided_slice %447 {offsets = [32, 0], sizes = [32, 8], strides = [1, 1]} : vector<64x8xf32> to vector<32x8xf32>
    %cst_128 = arith.constant dense<0.000000e+00> : vector<16x8xf32>
    %455 = tpu.matmul %453, %454, %cst_128 {dimension_numbers = #tpu.dot_dimension_numbers<[1], [0], [0], [1], [0, 0, 1, 1], [], []>} : vector<16x32xf32>, vector<32x8xf32>, vector<16x8xf32> -> vector<16x8xf32>
    %456 = arith.addf %451, %455 : vector<16x8xf32>
    %c0_129 = arith.constant 0 : index
    %c0_130 = arith.constant 0 : index
    %457 = vector.load %arg6[%c0_129, %c0_130] : memref<1x8xf32, #tpu.memory_space<vmem>>, vector<1x8xf32>
    %458 = vector.broadcast %457 : vector<1x8xf32> to vector<16x8xf32>
    %459 = arith.addf %456, %458 : vector<16x8xf32>
    %460 = vector.shape_cast %459 : vector<16x8xf32> to vector<8x2x8xf32>
    %461 = math.tanh %460 : vector<8x2x8xf32>
    %c0_131 = arith.constant 0 : index
    %c0_132 = arith.constant 0 : index
    %462 = vector.load %arg7[%c0_131, %c0_132] : memref<1x8xf32, #tpu.memory_space<vmem>>, vector<1x8xf32>
    %463 = vector.shape_cast %462 : vector<1x8xf32> to vector<1x1x8xf32>
    %464 = vector.broadcast %463 : vector<1x1x8xf32> to vector<8x2x8xf32>
    %465 = arith.mulf %461, %464 : vector<8x2x8xf32>
    %cst_133 = arith.constant dense<0.000000e+00> : vector<8x2xf32>
    %466 = vector.multi_reduction <add>, %465, %cst_133 [2] : vector<8x2x8xf32> to vector<8x2xf32>
    %c0_134 = arith.constant 0 : index
    %c0_135 = arith.constant 0 : index
    %467 = memref.load %arg8[%c0_134, %c0_135] : memref<1x1xf32, #tpu.memory_space<smem>>
    %468 = vector.broadcast %467 : f32 to vector<8x2xf32>
    %469 = arith.addf %466, %468 : vector<8x2xf32>
    %c0_136 = arith.constant 0 : index
    %c0_137 = arith.constant 0 : index
    %c0_138 = arith.constant 0 : index
    %470 = vector.load %arg9[%c0_136, %c0_137, %c0_138] : memref<1x8x2xf32, #tpu.memory_space<vmem>>, vector<1x8x2xf32>
    %471 = vector.shape_cast %470 : vector<1x8x2xf32> to vector<8x2xf32>
    %472 = vector.shape_cast %469 : vector<8x2xf32> to vector<1x8x2xf32>
    tpu.vector_store %arg9[%c0_136, %c0_137, %c0_138], %472 {strides = array<i32>} : memref<1x8x2xf32, #tpu.memory_space<vmem>>, vector<1x8x2xf32>,
    return
  }
  func.func @transform_0(%arg0: i32) -> (i32, i32, i32) {
    %c0_i32 = arith.constant 0 : i32
    %c0_i32_0 = arith.constant 0 : i32
    %c0_i32_1 = arith.constant 0 : i32
    return %c0_i32, %arg0, %c0_i32_0 : i32, i32, i32
  }
  func.func @transform_1(%arg0: i32) -> (i32, i32) {
    %c0_i32 = arith.constant 0 : i32
    %c0_i32_0 = arith.constant 0 : i32
    %c0_i32_1 = arith.constant 0 : i32
    return %c0_i32, %c0_i32_0 : i32, i32
  }
  func.func @transform_2(%arg0: i32) -> (i32, i32) {
    %c0_i32 = arith.constant 0 : i32
    %c0_i32_0 = arith.constant 0 : i32
    %c0_i32_1 = arith.constant 0 : i32
    return %c0_i32, %c0_i32_0 : i32, i32
  }
  func.func @transform_3(%arg0: i32) -> (i32, i32) {
    %c0_i32 = arith.constant 0 : i32
    %c0_i32_0 = arith.constant 0 : i32
    %c0_i32_1 = arith.constant 0 : i32
    return %c0_i32, %c0_i32_0 : i32, i32
  }
  func.func @transform_4(%arg0: i32) -> (i32, i32) {
    %c0_i32 = arith.constant 0 : i32
    %c0_i32_0 = arith.constant 0 : i32
    %c0_i32_1 = arith.constant 0 : i32
    return %c0_i32, %c0_i32_0 : i32, i32
  }
  func.func @transform_5(%arg0: i32) -> (i32, i32) {
    %c0_i32 = arith.constant 0 : i32
    %c0_i32_0 = arith.constant 0 : i32
    %c0_i32_1 = arith.constant 0 : i32
    return %c0_i32, %c0_i32_0 : i32, i32
  }
  func.func @transform_6(%arg0: i32) -> (i32, i32) {
    %c0_i32 = arith.constant 0 : i32
    %c0_i32_0 = arith.constant 0 : i32
    %c0_i32_1 = arith.constant 0 : i32
    return %c0_i32, %c0_i32_0 : i32, i32
  }
  func.func @transform_7(%arg0: i32) -> (i32, i32) {
    %c0_i32 = arith.constant 0 : i32
    %c0_i32_0 = arith.constant 0 : i32
    %c0_i32_1 = arith.constant 0 : i32
    return %c0_i32, %c0_i32_0 : i32, i32
  }
  func.func @transform_8(%arg0: i32) -> (i32, i32, i32) {
    %c0_i32 = arith.constant 0 : i32
    %c0_i32_0 = arith.constant 0 : i32
    %c0_i32_1 = arith.constant 0 : i32
    return %arg0, %c0_i32, %c0_i32_0 : i32, i32, i32
  }
}

</mosaic_0001>

<bundles_post_ra>
// kernel: tpu_custom_call.1
= control target key start
LH: loop header
LB: loop body
LE: loop exit
PB: predicated region body
PF: predicated region fallthrough
CT: control target
= control target key end

     0   :  { %14 = vsyncpa [#allocation8], 0  ;;  %s2316_s0 = inlined_call_operand.hbm [shape: f32[8,2,32], index: 0, kind: input, shape index: {}]   ;;  %s2317_s1 = inlined_call_operand.vmem [shape: f32[32,256], index: 1, kind: input, shape index: {}]   ;;  %s2318_s2 = inlined_call_operand.hbm [shape: f32[64,256], index: 2, kind: input, shape index: {}]   ;;  %s2319_s3 = inlined_call_operand.vmem [shape: f32[64,8], index: 3, kind: input, shape index: {}]   ;;  %s2320_s4 = inlined_call_operand.vmem [shape: f32[1,256], index: 4, kind: input, shape index: {}]   ;;  %s2321_s5 = inlined_call_operand.vmem [shape: f32[1,8], index: 5, kind: input, shape index: {}]   ;;  %s2322_s6 = inlined_call_operand.vmem [shape: f32[1,8], index: 6, kind: input, shape index: {}]   ;;  %s2323_s7 = inlined_call_operand.<no memory space> [shape: f32[1,1], index: 7, kind: input, shape index: {}]   ;;  %s2324_s8 = inlined_call_operand.vmem [shape: f32[1,8,2], index: 8, kind: output, shape index: {}]  }
   0x1   :  { %s20_s29 = sshll.u32 %s2316_s0, 4  ;;  %s21_s29 = int_to_ptr.hbm [resolvable:$true] %s20_s29 }
   0x2   :  { %15 = vsyncpa [#allocation10], 0  ;;  %s1815_s30 = smov [#allocation7]   ;;  %s35_s12 = sshll.u32 %s2318_s2, 4  ;;  %s36_s12 = int_to_ptr.hbm [resolvable:$true] %s35_s12 }
   0x3   :  { %s22_s9 = sshll.u32 %s1815_s30, 4  ;;  %s1816_s13 = smov 32   ;;  %s23_s9 = int_to_ptr.vmem [resolvable:$true] %s22_s9 }
   0x4   :  { %s1817_s14 = smov 2   ;;  %s1818_s15 = smov [#allocation9]  }
   0x5   :  { %28 = dma.hbm_to_vmem [thread:$0]  %s21_s29, 256, %s23_s9, [#allocation8], %s1816_s13, %s1816_s13, %s1817_s14  }
   0x6   :  { %s37_s16 = sshll.u32 %s1818_s15, 4  ;;  %s1819_s17 = smov 256   ;;  %s38_s16 = int_to_ptr.vmem [resolvable:$true] %s37_s16 }
   0x7   :  { %s1820_s0 = smov 16  }
   0x8   :  { %43 = dma.hbm_to_vmem [thread:$0]  %s36_s12, 2048, %s38_s16, [#allocation10], %s1819_s17, %s1819_s17, %s1820_s0  }
   0x9   :  { %1811 = dma.done.wait [#allocation8], 256  }
   0xa   :  { %1812 = vsyncadd [#allocation8], 4294967040 }
   0xb   :  { %1813 = dma.done.wait [#allocation10], 2048  }
   0xc   :  { %1814 = vsyncadd [#allocation10], 4294965248  ;;  %v1877_v0 = vld [vmem:[#allocation9 + $0x70] sm:$0xff]  ;;  %v78_v1 = vld [vmem:[%s2317_s1 + $0x38] sm:$0xff]  ;;  %vm109_vm0 = vcmask 261120   ;;  %v1821_v33 = vmov 0.0  }
   0xd   :  { %v1882_v2 = vld [vmem:[#allocation9 + $0x60] sm:$0xff]  ;;  %232 = vmatpush.msra.mxu2 %v1877_v0  ;;  %149 = vmatpush.msra.mxu1 %v78_v1  ;;  %v76_v3 = vld [vmem:[%s2317_s1 + $0x28] sm:$0xff]  ;;  %v77_v4 = vld [vmem:[%s2317_s1 + $0x30] sm:$0xff]  ;;  %s1823_s12 = smov 96   ;;  %vm347_vm9 = vcmask 254976   ;;  %vm220_vm10 = vcmask 523264  }
   0xe   :  { %v1891_v5 = vld [vmem:[#allocation9 + $0x50] sm:$0xff]  ;;  %126 = vmatpush.msra.mxu0 %v77_v4  ;;  %v74_v6 = vld [vmem:[%s2317_s1 + $0x18] sm:$0xff]  ;;  %v75_v7 = vld [vmem:[%s2317_s1 + $0x20] sm:$0xff] }
   0xf   :  { %v1899_v8 = vld [vmem:[#allocation9 + $0x40] sm:$0xff]  ;;  %233 = vmatpush.msra.mxu2 %v1882_v2  ;;  %150 = vmatpush.msra.mxu1 %v76_v3  ;;  %v72_v9 = vld [vmem:[%s2317_s1 + $0x8] sm:$0xff]  ;;  %v1905_v10 = vld [vmem:[#allocation9 + $0x78] sm:$0xff] }
  0x10   :  { %v73_v11 = vld [vmem:[%s2317_s1 + $0x10] sm:$0xff]  ;;  %127 = vmatpush.msra.mxu0 %v75_v7  ;;  %252 = vmatpush.msra.mxu3 %v1905_v10  ;;  %v62_v12 = vld [vmem:[#allocation7] sm:$0x3]  ;;  %v63_v13 = vld [vmem:[#allocation7 + $0x2] sm:$0x3] }
  0x11   :  { %v64_v14 = vld [vmem:[#allocation7 + $0x4] sm:$0x3]  ;;  %234 = vmatpush.msra.mxu2 %v1891_v5  ;;  %151 = vmatpush.msra.mxu1 %v74_v6  ;;  %v65_v15 = vld [vmem:[#allocation7 + $0x6] sm:$0x3]  ;;  %92 = vst [vmem:[#allocation1] ss:$4 sm:$0xff] %v62_v12 }
  0x12   :  { %v1912_v16 = vld [vmem:[#allocation9 + $0x68] sm:$0xff]  ;;  %128 = vmatpush.msra.mxu0 %v73_v11  ;;  %94 = vst [vmem:[#allocation1 + $0x1] ss:$4 sm:$0xff] %v63_v13  ;;  %v1914_v17 = vld [vmem:[#allocation9 + $0x30] sm:$0xff]  ;;  %v1920_v19 = vld [vmem:[#allocation9 + $0x58] sm:$0xff] }
  0x13   :  { %253 = vmatpush.msra.mxu3 %v1912_v16  ;;  %v71_v18 = vld [vmem:[%s2317_s1] sm:$0xff]  ;;  %235 = vmatpush.msra.mxu2 %v1899_v8  ;;  %96 = vst [vmem:[#allocation1 + $0x2] ss:$4 sm:$0xff] %v64_v14  ;;  %v1925_v21 = vld [vmem:[#allocation9 + $0x20] sm:$0xff]  ;;  %v66_v22 = vld [vmem:[#allocation7 + $0x8] sm:$0x3] }
  0x14   :  { %152 = vmatpush.msra.mxu1 %v72_v9  ;;  %v1923_v20 = vld [vmem:[#allocation9 + $0x48] sm:$0xff]  ;;  %98 = vst [vmem:[#allocation1 + $0x3] ss:$4 sm:$0xff] %v65_v15  ;;  %129 = vmatpush.msra.mxu0 %v71_v18  ;;  %v1929_v23 = vld [vmem:[#allocation9 + $0x38] sm:$0xff]  ;;  %v1932_v26 = vld [vmem:[#allocation9 + $0x10] sm:$0xff] }
  0x15   :  { %254 = vmatpush.msra.mxu3 %v1920_v19  ;;  %236 = vmatpush.msra.mxu2 %v1914_v17  ;;  %v67_v24 = vld [vmem:[#allocation7 + $0xa] sm:$0x3]  ;;  %v68_v25 = vld [vmem:[#allocation7 + $0xc] sm:$0x3]  ;;  %v69_v27 = vld [vmem:[#allocation7 + $0xe] sm:$0x3] }
  0x16   :  { %390 = vmatpush.msrb.mxu1 %v1905_v10  ;;  %100 = vst [vmem:[#allocation1 + $0x20] ss:$4 sm:$0xff] %v66_v22  ;;  %370 = vmatpush.msrb.mxu0 %v1877_v0  ;;  %v1937_v28 = vld [vmem:[#allocation9 + $0x28] sm:$0xff]  ;;  %v1940_v29 = vld [vmem:[#allocation9] sm:$0xff]  ;;  %v1947_v30 = vld [vmem:[#allocation9 + $0x18] sm:$0xff] }
  0x17   :  { %255 = vmatpush.msra.mxu3 %v1923_v20  ;;  %237 = vmatpush.msra.mxu2 %v1925_v21  ;;  %102 = vst [vmem:[#allocation1 + $0x21] ss:$4 sm:$0xff] %v67_v24  ;;  %v1954_v32 = vld [vmem:[#allocation9 + $0x8] sm:$0xff] }
  0x18   :  { %391 = vmatpush.msrb.mxu1 %v1912_v16  ;;  %104 = vst [vmem:[#allocation1 + $0x22] ss:$4 sm:$0xff] %v68_v25  ;;  %371 = vmatpush.msrb.mxu0 %v1882_v2  ;;  %v2020_v35 = vld [vmem:[%s2320_s4] sm:$0x3]  ;;  %s1822_s4 = smov 64  }
  0x19   :  { %256 = vmatpush.msra.mxu3 %v1929_v23  ;;  %238 = vmatpush.msra.mxu2 %v1932_v26  ;;  %106 = vst [vmem:[#allocation1 + $0x23] ss:$4 sm:$0xff] %v69_v27  ;;  %v81_v36 = vperm.slane %v2020_v35, 1  ;;  %v80_v37 = vperm.slane %v2020_v35, 0 }
  0x1a   :  { %392 = vmatpush.msrb.mxu1 %v1920_v19  ;;  %372 = vmatpush.msrb.mxu0 %v1891_v5 }
  0x1b   :  { %257 = vmatpush.msra.mxu3 %v1937_v28  ;;  %v107_v31 = vld.sshfl [vmem:[#allocation1] sm:$0xff pattern:$0x73625140]  ;;  %239 = vmatpush.msra.mxu2 %v1940_v29 }
  0x1c   :  { %393 = vmatpush.msrb.mxu1 %v1923_v20  ;;  %1570 = vmatmul.msk.f32.vlgmr.msra.gmra.mxu0 %vm109_vm0, %v107_v31 }
  0x1d   :  { %1572 = vmatmul.msk.f32.vlgmr.msra.gmra.mxu1 %vm109_vm0, %v107_v31  ;;  %240 = vmatmul.f32.vlgmr.msra.gmra.mxu2 %v1821_v33 }
  0x1e   :  { %258 = vmatpush.msra.mxu3 %v1947_v30  ;;  %373 = vmatpush.msrb.mxu0 %v1899_v8 }
  0x1f   :  { %394 = vmatpush.msrb.mxu1 %v1929_v23  ;;  %509 = vmatpush.msrb.mxu2 %v1877_v0 }
  0x20   :  { %259 = vmatpush.msra.mxu3 %v1954_v32  ;;  %374 = vmatpush.msrb.mxu0 %v1914_v17  ;;  %v108_v34 = vld.sshfl [vmem:[#allocation1 + $0x20] sm:$0xff pattern:$0x73625140] }
  0x21   :  { %260 = vmatmul.f32.vlgmr.msra.gmra.mxu3 %v1821_v33  ;;  %395 = vmatpush.msrb.mxu1 %v1937_v28 }
  0x22   :  { %529 = vmatpush.msrb.mxu3 %v1905_v10  ;;  %375 = vmatpush.msrb.mxu0 %v1925_v21 }
  0x23   :  { %510 = vmatpush.msrb.mxu2 %v1882_v2  ;;  %396 = vmatpush.msrb.mxu1 %v1947_v30 }
  0x24   :  { %530 = vmatpush.msrb.mxu3 %v1912_v16  ;;  %1571 = vmatmul.msk.f32.gmra.mxu0 %vm109_vm0, %v108_v34 }
  0x25   :  { %1573 = vmatmul.msk.f32.gmra.mxu1 %vm109_vm0, %v108_v34  ;;  %376 = vmatpush.msrb.mxu0 %v1932_v26 }
  0x26   :  { %397 = vmatpush.msrb.mxu1 %v1954_v32  ;;  %511 = vmatpush.msrb.mxu2 %v1891_v5 }
  0x27   :  { %531 = vmatpush.msrb.mxu3 %v1920_v19  ;;  %377 = vmatpush.msrb.mxu0 %v1940_v29 }
  0x28   :  { %668 = vmatpush.msra.mxu1 %v1905_v10  ;;  %512 = vmatpush.msrb.mxu2 %v1899_v8 }
  0x29   :  { %532 = vmatpush.msrb.mxu3 %v1923_v20  ;;  %648 = vmatpush.msra.mxu0 %v1877_v0 }
  0x2a   :  { %669 = vmatpush.msra.mxu1 %v1912_v16  ;;  %513 = vmatpush.msrb.mxu2 %v1914_v17 }
  0x2b   :  { %533 = vmatpush.msrb.mxu3 %v1929_v23  ;;  %649 = vmatpush.msra.mxu0 %v1882_v2 }
  0x2c   :  { %670 = vmatpush.msra.mxu1 %v1920_v19  ;;  %514 = vmatpush.msrb.mxu2 %v1925_v21 }
  0x2d   :  { %534 = vmatpush.msrb.mxu3 %v1937_v28  ;;  %650 = vmatpush.msra.mxu0 %v1891_v5 }
  0x2e   :  { %671 = vmatpush.msra.mxu1 %v1923_v20  ;;  %515 = vmatpush.msrb.mxu2 %v1932_v26 }
  0x2f   :  { %535 = vmatpush.msrb.mxu3 %v1947_v30  ;;  %651 = vmatpush.msra.mxu0 %v1899_v8 }
  0x30   :  { %672 = vmatpush.msra.mxu1 %v1929_v23  ;;  %516 = vmatpush.msrb.mxu2 %v1940_v29 }
  0x31   :  { %536 = vmatpush.msrb.mxu3 %v1954_v32  ;;  %652 = vmatpush.msra.mxu0 %v1914_v17 }
  0x32   :  { %673 = vmatpush.msra.mxu1 %v1937_v28  ;;  %787 = vmatpush.msra.mxu2 %v1877_v0 }
  0x33   :  { %807 = vmatpush.msra.mxu3 %v1905_v10  ;;  %653 = vmatpush.msra.mxu0 %v1925_v21 }
  0x34   :  { %674 = vmatpush.msra.mxu1 %v1947_v30  ;;  %788 = vmatpush.msra.mxu2 %v1882_v2 }
  0x35   :  { %808 = vmatpush.msra.mxu3 %v1912_v16  ;;  %654 = vmatpush.msra.mxu0 %v1932_v26 }
  0x36   :  { %675 = vmatpush.msra.mxu1 %v1954_v32  ;;  %789 = vmatpush.msra.mxu2 %v1891_v5 }
  0x37   :  { %809 = vmatpush.msra.mxu3 %v1920_v19  ;;  %655 = vmatpush.msra.mxu0 %v1940_v29 }
  0x38   :  { %790 = vmatpush.msra.mxu2 %v1899_v8 }
  0x39   :  { %810 = vmatpush.msra.mxu3 %v1923_v20 }
  0x3a   :  { %791 = vmatpush.msra.mxu2 %v1914_v17 }
  0x3b   :  { %811 = vmatpush.msra.mxu3 %v1929_v23 }
  0x3c   :  { %792 = vmatpush.msra.mxu2 %v1925_v21 }
  0x3d   :  { %812 = vmatpush.msra.mxu3 %v1937_v28 }
  0x3e   :  { %793 = vmatpush.msra.mxu2 %v1932_v26 }
  0x3f   :  { %813 = vmatpush.msra.mxu3 %v1947_v30 }
  0x40   :  { %794 = vmatpush.msra.mxu2 %v1940_v29 }
  0x41   :  { %814 = vmatpush.msra.mxu3 %v1954_v32 }
  0x99   :  { %v131_v39 = vpop.f32.mrf.mxu0 }
  0x9a   :  { %v154_v38 = vpop.f32.mrf.mxu1  ;;  %v132_v41 = vadd.f32 %v131_v39, %v80_v37 }
  0x9b   :  { %v155_v40 = vadd.f32 %v154_v38, %v81_v36 }
  0x9c   :  { %v162_v45 = vrot.slane %v132_v41, 2  ;;  %174 = vst [vmem:[#allocation2] sm:$0x3] %v132_v41  ;;  %v163_v46 = vrot.slane %v132_v41, 4  ;;  %v164_v47 = vrot.slane %v132_v41, 6 }
  0x9d   :  { %v184_v42 = vrot.slane %v155_v40, 2  ;;  %v185_v43 = vrot.slane %v155_v40, 4  ;;  %v186_v44 = vrot.slane %v155_v40, 6  ;;  %196 = vst [vmem:[#allocation3] sm:$0x3] %v155_v40 }
  0x9e   :  { %175 = vst [vmem:[#allocation2 + $0x2] sm:$0x3] %v162_v45 }
  0x9f   :  { %197 = vst [vmem:[#allocation3 + $0x2] sm:$0x3] %v184_v42 }
  0xa0   :  { %198 = vst [vmem:[#allocation3 + $0x4] sm:$0x3] %v185_v43  ;;  %v241_v50 = vpop.f32.mrf.mxu2 }
  0xa1   :  { %199 = vst [vmem:[#allocation3 + $0x6] sm:$0x3] %v186_v44 }
  0xa2   :  { %v157_v48 = vpop.f32.mrf.mxu1  ;;  %176 = vst [vmem:[#allocation2 + $0x4] sm:$0x3] %v163_v46 }
  0xa3   :  { %v158_v49 = vadd.f32 %v157_v48, %v81_v36  ;;  %177 = vst [vmem:[#allocation2 + $0x6] sm:$0x3] %v164_v47  ;;  %v264_v54 = vld [vmem:[#allocation2] sm:$0x3] }
  0xa4   :  { %v265_v55 = vadd.f32 %v264_v54, %v241_v50  ;;  %v261_v56 = vpop.f32.mrf.mxu3 }
  0xa5   :  { %v187_v51 = vrot.slane %v158_v49, 2  ;;  %v188_v52 = vrot.slane %v158_v49, 4  ;;  %v189_v53 = vrot.slane %v158_v49, 6  ;;  %200 = vst [vmem:[#allocation3 + $0x8] sm:$0x3] %v158_v49 }
  0xa6   :  { %1619 = vtanh.f32 %v265_v55  ;;  %v1574_v61 = vmul.f32 -1.442695, %v265_v55 }
  0xa7   :  { %201 = vst [vmem:[#allocation3 + $0xa] sm:$0x3] %v187_v51 }
  0xa8   :  { %202 = vst [vmem:[#allocation3 + $0xc] sm:$0x3] %v188_v52 }
  0xa9   :  { %203 = vst [vmem:[#allocation3 + $0xe] sm:$0x3] %v189_v53 }
  0xac   :  { %v1620_v57 = vpop.eup %1619 }
  0xad   :  { %311 = vrot.lane.b32.xlu0 %v1620_v57, %s1816_s13  ;;  %v134_v57 = vpop.f32.mrf.mxu0 }
  0xb0   :  { %v267_v58 = vld [vmem:[#allocation3 + $0xe] sm:$0x3] }
  0xb1   :  { %v268_v59 = vadd.f32 %v267_v58, %v261_v56  ;;  %v135_v58 = vadd.f32 %v134_v57, %v80_v37  ;;  %v403_v37 = vld [vmem:[#allocation2 + $0x2] sm:$0x3] }
  0xb3   :  { %1621 = vtanh.f32 %v268_v59  ;;  %v1575_v63 = vmul.f32 -1.442695, %v268_v59  ;;  %v165_v59 = vrot.slane %v135_v58, 2  ;;  %178 = vst [vmem:[#allocation2 + $0x8] sm:$0x3] %v135_v58 }
  0xb4   :  { %1623 = vpow2.f32 %v1574_v61  ;;  %v167_v61 = vrot.slane %v135_v58, 6 }
  0xb5   :  { %1625 = vpow2.f32 %v1575_v63  ;;  %179 = vst [vmem:[#allocation2 + $0xa] sm:$0x3] %v165_v59 }
  0xb6   :  { %181 = vst [vmem:[#allocation2 + $0xe] sm:$0x3] %v167_v61 }
  0xb9   :  { %v1622_v60 = vpop.eup %1621 }
  0xba   :  { %322 = vrot.lane.b32.xlu0 %v1622_v60, %s1816_s13  ;;  %v1624_v62 = vpop.eup %1623  ;;  %v166_v60 = vrot.slane %v135_v58, 4 }
  0xbb   :  { %v272_v1 = vadd.f32 1.0, %v1624_v62  ;;  %v1626_v3 = vpop.eup %1625 }
  0xbc   :  { %v291_v6 = vadd.f32 1.0, %v1626_v3  ;;  %180 = vst [vmem:[#allocation2 + $0xc] sm:$0x3] %v166_v60 }
  0xbd   :  { %1627 = vrcp.f32 %v272_v1  ;;  %v284_v15 = vand.u32 2147483648, %v272_v1  ;;  %vm278_vm2 = vweird.f32 %v272_v1  ;;  %v282_v18 = vand.u32 2147483647, %v272_v1 }
  0xbe   :  { %1629 = vrcp.f32 %v291_v6  ;;  %v303_v38 = vand.u32 2147483648, %v291_v6  ;;  %vm297_vm6 = vweird.f32 %v291_v6  ;;  %v301_v39 = vand.u32 2147483647, %v291_v6 }
  0xbf   :  { %v285_v25 = vor.u32 1.1754944e-38, %v284_v15  ;;  %vm283_vm4 = vcmp.eq.f32.partialorder %v282_v18, 8.507059e+37 }
  0xc0   :  { %v304_v41 = vor.u32 1.1754944e-38, %v303_v38  ;;  %vm302_vm8 = vcmp.eq.f32.partialorder %v301_v39, 8.507059e+37 }
  0xc3   :  { %v1628_v4 = vpop.eup %1627 }
  0xc4   :  { %v274_v7 = vmul.f32 %v1628_v4, %v272_v1  ;;  %v1630_v11 = vpop.eup %1629  ;;  %vm279_vm1 = vweird.f32 %v1628_v4 }
  0xc5   :  { %v293_v13 = vmul.f32 %v1630_v11, %v291_v6  ;;  %vm280_vm3 = vmor %vm278_vm2, %vm279_vm1  ;;  %vm298_vm5 = vweird.f32 %v1630_v11 }
  0xc6   :  { %v275_v9 = vsub.f32 1.0, %v274_v7  ;;  %vm299_vm7 = vmor %vm297_vm6, %vm298_vm5 }
  0xc7   :  { %v294_v22 = vsub.f32 1.0, %v293_v13 }
  0xc8   :  { %v276_v12 = vmul.f32 %v1628_v4, %v275_v9 }
  0xc9   :  { %v295_v27 = vmul.f32 %v1630_v11, %v294_v22 }
  0xca   :  { %v277_v14 = vadd.f32 %v1628_v4, %v276_v12 }
  0xcb   :  { %v296_v36 = vadd.f32 %v1630_v11, %v295_v27 }
  0xcc   :  { %v281_v24 = vsel %vm280_vm3, %v1628_v4, %v277_v14  ;;  %v406_v4 = vld [vmem:[#allocation3 + $0xc] sm:$0x3] }
  0xcd   :  { %v286_v33 = vsel %vm283_vm4, %v285_v25, %v281_v24  ;;  %v300_v40 = vsel %vm299_vm7, %v1630_v11, %v296_v36 }
  0xce   :  { %v305_v42 = vsel %vm302_vm8, %v304_v41, %v300_v40  ;;  %v309_v45 = vmul.f32 0.0, %v286_v33 }
  0xcf   :  { %v320_v49 = vmul.f32 0.0, %v305_v42 }
 0x11f   :  { %v312_v31 = vpop.permute.xlu0 %311 }
 0x120   :  { %v314_v34 = vmul.f32 %v312_v31, %v286_v33 }
 0x122   :  { %316 = vrot.lane.b32.xlu1 %v314_v34, %s1816_s13 }
 0x12c   :  { %v323_v43 = vpop.permute.xlu0 %322 }
 0x12d   :  { %v325_v44 = vmul.f32 %v323_v43, %v305_v42 }
 0x12f   :  { %327 = vrot.lane.b32.xlu1 %v325_v44, %s1816_s13 }
 0x194   :  { %v317_v46 = vpop.permute.xlu1 %316 }
 0x195   :  { %v2030_v47 = vadd.f32 %v317_v46, %v309_v45 }
 0x197   :  { %1631 = vtanh.f32 %v2030_v47 }
 0x19d   :  { %v1632_v48 = vpop.eup %1631 }
 0x19e   :  { %333 = vrot.lane.b32.xlu2 %v1632_v48, %s1816_s13 }
 0x1a1   :  { %v328_v50 = vpop.permute.xlu1 %327 }
 0x1a2   :  { %v2034_v51 = vadd.f32 %v328_v50, %v320_v49 }
 0x1a4   :  { %1633 = vtanh.f32 %v2034_v51 }
 0x1aa   :  { %v1634_v52 = vpop.eup %1633 }
 0x1ab   :  { %339 = vrot.lane.b32.xlu2 %v1634_v52, %s1816_s13 }
 0x1f8   :  { %v334_v53 = vpop.permute.xlu2 %333 }
 0x1f9   :  { %v336_v54 = vmul.f32 %v334_v53, %v286_v33 }
 0x1fb   :  { %344 = vrot.lane.b32.xlu0 %v336_v54, %s1822_s4 }
 0x205   :  { %v340_v55 = vpop.permute.xlu2 %339 }
 0x206   :  { %v2039_v56 = vmul.f32 %v340_v55, %v305_v42 }
 0x208   :  { %355 = vrot.lane.b32.xlu1 %v2039_v56, %s1823_s12 }
 0x26d   :  { %v345_v62 = vpop.permute.xlu0 %344 }
 0x26e   :  { %348 = vst.msk [vmem:[#allocation4] sm:$0x3] %vm347_vm9, %v345_v62 }
 0x27a   :  { %v356_v63 = vpop.permute.xlu1 %355 }
 0x27b   :  { %v358_v1 = vsel %vm109_vm0, %v345_v62, %v356_v63 }
 0x27c   :  { %1576 = vmatmul.msk.f32.vlgmr.msrb.gmra.mxu0 %vm220_vm10, %v358_v1  ;;  %1577 = vmatmul.msk.f32.vlgmr.msrb.gmra.mxu1 %vm220_vm10, %v358_v1 }
 0x27d   :  { %926 = vmatpush.msrb.mxu0 %v1877_v0  ;;  %946 = vmatpush.msrb.mxu1 %v1905_v10 }
 0x27f   :  { %927 = vmatpush.msrb.mxu0 %v1882_v2  ;;  %947 = vmatpush.msrb.mxu1 %v1912_v16 }
 0x281   :  { %928 = vmatpush.msrb.mxu0 %v1891_v5  ;;  %948 = vmatpush.msrb.mxu1 %v1920_v19 }
 0x283   :  { %929 = vmatpush.msrb.mxu0 %v1899_v8  ;;  %949 = vmatpush.msrb.mxu1 %v1923_v20 }
 0x285   :  { %930 = vmatpush.msrb.mxu0 %v1914_v17  ;;  %950 = vmatpush.msrb.mxu1 %v1929_v23 }
 0x287   :  { %931 = vmatpush.msrb.mxu0 %v1925_v21  ;;  %951 = vmatpush.msrb.mxu1 %v1937_v28 }
 0x289   :  { %932 = vmatpush.msrb.mxu0 %v1932_v26  ;;  %952 = vmatpush.msrb.mxu1 %v1947_v30 }
 0x28b   :  { %933 = vmatpush.msrb.mxu0 %v1940_v29  ;;  %953 = vmatpush.msrb.mxu1 %v1954_v32 }
 0x2f9   :  { %v379_v35 = vpop.f32.mrf.mxu0  ;;  %v399_v3 = vpop.f32.mrf.mxu1 }
 0x2fa   :  { %v404_v6 = vadd.f32 %v403_v37, %v379_v35  ;;  %v407_v7 = vadd.f32 %v406_v4, %v399_v3 }
 0x2fc   :  { %1635 = vtanh.f32 %v404_v6  ;;  %v1578_v12 = vmul.f32 -1.442695, %v404_v6  ;;  %v1579_v18 = vmul.f32 -1.442695, %v407_v7 }
 0x2fd   :  { %1637 = vtanh.f32 %v407_v7 }
 0x2fe   :  { %1639 = vpow2.f32 %v1578_v12 }
 0x302   :  { %v1636_v9 = vpop.eup %1635 }
 0x303   :  { %v1638_v11 = vpop.eup %1637  ;;  %450 = vrot.lane.b32.xlu2 %v1636_v9, %s1816_s13 }
 0x304   :  { %461 = vrot.lane.b32.xlu0 %v1638_v11, %s1816_s13  ;;  %v1640_v13 = vpop.eup %1639  ;;  %v542_v11 = vld [vmem:[#allocation2 + $0x4] sm:$0x3] }
 0x305   :  { %v411_v14 = vadd.f32 1.0, %v1640_v13  ;;  %v545_v13 = vld [vmem:[#allocation3 + $0xa] sm:$0x3] }
 0x307   :  { %1641 = vrcp.f32 %v411_v14  ;;  %v423_v34 = vand.u32 2147483648, %v411_v14  ;;  %vm417_vm12 = vweird.f32 %v411_v14  ;;  %v421_v36 = vand.u32 2147483647, %v411_v14 }
 0x308   :  { %1643 = vpow2.f32 %v1579_v18 }
 0x309   :  { %v424_v39 = vor.u32 1.1754944e-38, %v423_v34  ;;  %vm422_vm14 = vcmp.eq.f32.partialorder %v421_v36, 8.507059e+37 }
 0x30d   :  { %v1642_v15 = vpop.eup %1641 }
 0x30e   :  { %v413_v22 = vmul.f32 %v1642_v15, %v411_v14  ;;  %v1644_v27 = vpop.eup %1643  ;;  %vm418_vm11 = vweird.f32 %v1642_v15 }
 0x30f   :  { %v430_v31 = vadd.f32 1.0, %v1644_v27  ;;  %vm419_vm13 = vmor %vm417_vm12, %vm418_vm11 }
 0x310   :  { %v414_v24 = vsub.f32 1.0, %v413_v22 }
 0x311   :  { %1645 = vrcp.f32 %v430_v31  ;;  %v442_v49 = vand.u32 2147483648, %v430_v31  ;;  %vm436_vm1 = vweird.f32 %v430_v31  ;;  %v440_v50 = vand.u32 2147483647, %v430_v31 }
 0x312   :  { %v415_v25 = vmul.f32 %v1642_v15, %v414_v24 }
 0x313   :  { %v443_v53 = vor.u32 1.1754944e-38, %v442_v49  ;;  %vm441_vm3 = vcmp.eq.f32.partialorder %v440_v50, 8.507059e+37 }
 0x314   :  { %v416_v33 = vadd.f32 %v1642_v15, %v415_v25 }
 0x316   :  { %v420_v38 = vsel %vm419_vm13, %v1642_v15, %v416_v33 }
 0x317   :  { %v425_v41 = vsel %vm422_vm14, %v424_v39, %v420_v38  ;;  %v1646_v43 = vpop.eup %1645 }
 0x318   :  { %v432_v44 = vmul.f32 %v1646_v43, %v430_v31  ;;  %vm437_vm15 = vweird.f32 %v1646_v43  ;;  %v448_v58 = vmul.f32 %v425_v41, %v2030_v47 }
 0x319   :  { %vm438_vm2 = vmor %vm436_vm1, %vm437_vm15 }
 0x31a   :  { %v433_v45 = vsub.f32 1.0, %v432_v44 }
 0x31c   :  { %v434_v46 = vmul.f32 %v1646_v43, %v433_v45 }
 0x31e   :  { %v435_v48 = vadd.f32 %v1646_v43, %v434_v46 }
 0x320   :  { %v439_v52 = vsel %vm438_vm2, %v1646_v43, %v435_v48 }
 0x321   :  { %v444_v55 = vsel %vm441_vm3, %v443_v53, %v439_v52 }
 0x322   :  { %v459_v59 = vmul.f32 %v444_v55, %v2034_v51 }
 0x35d   :  { %v451_v40 = vpop.permute.xlu2 %450 }
 0x35e   :  { %v453_v42 = vmul.f32 %v451_v40, %v425_v41 }
 0x360   :  { %455 = vrot.lane.b32.xlu1 %v453_v42, %s1816_s13 }
 0x376   :  { %v462_v54 = vpop.permute.xlu0 %461 }
 0x377   :  { %v464_v57 = vmul.f32 %v462_v54, %v444_v55 }
 0x379   :  { %466 = vrot.lane.b32.xlu2 %v464_v57, %s1816_s13 }
 0x3d2   :  { %v456_v60 = vpop.permute.xlu1 %455 }
 0x3d3   :  { %v467_v61 = vpop.permute.xlu2 %466  ;;  %v2071_v62 = vadd.f32 %v456_v60, %v448_v58 }
 0x3d4   :  { %v2073_v63 = vadd.f32 %v467_v61, %v459_v59 }
 0x3d5   :  { %1647 = vtanh.f32 %v2071_v62 }
 0x3d6   :  { %1649 = vtanh.f32 %v2073_v63 }
 0x3db   :  { %v1648_v1 = vpop.eup %1647 }
 0x3dc   :  { %v1650_v35 = vpop.eup %1649  ;;  %472 = vrot.lane.b32.xlu0 %v1648_v1, %s1816_s13 }
 0x3dd   :  { %478 = vrot.lane.b32.xlu1 %v1650_v35, %s1816_s13 }
 0x44e   :  { %v473_v37 = vpop.permute.xlu0 %472 }
 0x44f   :  { %v479_v47 = vpop.permute.xlu1 %478  ;;  %v475_v3 = vmul.f32 %v473_v37, %v425_v41 }
 0x450   :  { %v2079_v51 = vmul.f32 %v479_v47, %v444_v55 }
 0x451   :  { %483 = vrot.lane.b32.xlu2 %v475_v3, %s1822_s4 }
 0x452   :  { %494 = vrot.lane.b32.xlu0 %v2079_v51, %s1823_s12 }
 0x4ab   :  { %v484_v4 = vpop.permute.xlu2 %483 }
 0x4ac   :  { %487 = vst.msk [vmem:[#allocation4 + $0x2] sm:$0x3] %vm347_vm9, %v484_v4 }
 0x4c4   :  { %v495_v6 = vpop.permute.xlu0 %494 }
 0x4c5   :  { %v497_v7 = vsel %vm109_vm0, %v484_v4, %v495_v6 }
 0x4c6   :  { %1580 = vmatmul.msk.f32.vlgmr.msrb.gmra.mxu2 %vm220_vm10, %v497_v7  ;;  %1581 = vmatmul.msk.f32.vlgmr.msrb.gmra.mxu3 %vm220_vm10, %v497_v7 }
 0x4c7   :  { %1065 = vmatpush.msrb.mxu2 %v1877_v0  ;;  %1085 = vmatpush.msrb.mxu3 %v1905_v10 }
 0x4c9   :  { %1066 = vmatpush.msrb.mxu2 %v1882_v2  ;;  %1086 = vmatpush.msrb.mxu3 %v1912_v16 }
 0x4cb   :  { %1067 = vmatpush.msrb.mxu2 %v1891_v5  ;;  %1087 = vmatpush.msrb.mxu3 %v1920_v19 }
 0x4cd   :  { %1068 = vmatpush.msrb.mxu2 %v1899_v8  ;;  %1088 = vmatpush.msrb.mxu3 %v1923_v20 }
 0x4cf   :  { %1069 = vmatpush.msrb.mxu2 %v1914_v17  ;;  %1089 = vmatpush.msrb.mxu3 %v1929_v23 }
 0x4d1   :  { %1070 = vmatpush.msrb.mxu2 %v1925_v21  ;;  %1090 = vmatpush.msrb.mxu3 %v1937_v28 }
 0x4d3   :  { %1071 = vmatpush.msrb.mxu2 %v1932_v26  ;;  %1091 = vmatpush.msrb.mxu3 %v1947_v30 }
 0x4d5   :  { %1072 = vmatpush.msrb.mxu2 %v1940_v29  ;;  %1092 = vmatpush.msrb.mxu3 %v1954_v32 }
 0x549   :  { %v518_v9 = vpop.f32.mrf.mxu2  ;;  %v538_v12 = vpop.f32.mrf.mxu3 }
 0x54a   :  { %v543_v14 = vadd.f32 %v542_v11, %v518_v9  ;;  %v546_v15 = vadd.f32 %v545_v13, %v538_v12 }
 0x54c   :  { %1651 = vtanh.f32 %v543_v14  ;;  %v1583_v24 = vmul.f32 -1.442695, %v546_v15  ;;  %v1582_v33 = vmul.f32 -1.442695, %v543_v14 }
 0x54d   :  { %1653 = vtanh.f32 %v546_v15 }
 0x54e   :  { %1655 = vpow2.f32 %v1583_v24 }
 0x552   :  { %v1652_v18 = vpop.eup %1651 }
 0x553   :  { %v1654_v22 = vpop.eup %1653  ;;  %589 = vrot.lane.b32.xlu1 %v1652_v18, %s1816_s13 }
 0x554   :  { %600 = vrot.lane.b32.xlu2 %v1654_v22, %s1816_s13  ;;  %v1656_v25 = vpop.eup %1655 }
 0x555   :  { %v569_v27 = vadd.f32 1.0, %v1656_v25 }
 0x557   :  { %1657 = vrcp.f32 %v569_v27  ;;  %v581_v42 = vand.u32 2147483648, %v569_v27  ;;  %vm575_vm5 = vweird.f32 %v569_v27  ;;  %v579_v43 = vand.u32 2147483647, %v569_v27 }
 0x558   :  { %1659 = vpow2.f32 %v1582_v33 }
 0x559   :  { %v582_v45 = vor.u32 1.1754944e-38, %v581_v42  ;;  %vm580_vm7 = vcmp.eq.f32.partialorder %v579_v43, 8.507059e+37 }
 0x55d   :  { %v1658_v31 = vpop.eup %1657 }
 0x55e   :  { %v571_v34 = vmul.f32 %v1658_v31, %v569_v27  ;;  %v1660_v38 = vpop.eup %1659  ;;  %vm576_vm4 = vweird.f32 %v1658_v31 }
 0x55f   :  { %v550_v40 = vadd.f32 1.0, %v1660_v38  ;;  %vm577_vm6 = vmor %vm575_vm5, %vm576_vm4 }
 0x560   :  { %v572_v36 = vsub.f32 1.0, %v571_v34 }
 0x561   :  { %1661 = vrcp.f32 %v550_v40  ;;  %v562_v57 = vand.u32 2147483648, %v550_v40  ;;  %vm556_vm11 = vweird.f32 %v550_v40  ;;  %v560_v58 = vand.u32 2147483647, %v550_v40 }
 0x562   :  { %v573_v39 = vmul.f32 %v1658_v31, %v572_v36 }
 0x563   :  { %v563_v60 = vor.u32 1.1754944e-38, %v562_v57  ;;  %vm561_vm13 = vcmp.eq.f32.partialorder %v560_v58, 8.507059e+37 }
 0x564   :  { %v574_v41 = vadd.f32 %v1658_v31, %v573_v39 }
 0x566   :  { %v578_v44 = vsel %vm577_vm6, %v1658_v31, %v574_v41 }
 0x567   :  { %v583_v48 = vsel %vm580_vm7, %v582_v45, %v578_v44  ;;  %v1662_v49 = vpop.eup %1661 }
 0x568   :  { %v552_v52 = vmul.f32 %v1662_v49, %v550_v40  ;;  %vm557_vm8 = vweird.f32 %v1662_v49  ;;  %v598_v37 = vmul.f32 %v583_v48, %v2073_v63 }
 0x569   :  { %vm558_vm12 = vmor %vm556_vm11, %vm557_vm8 }
 0x56a   :  { %v553_v53 = vsub.f32 1.0, %v552_v52 }
 0x56c   :  { %v554_v54 = vmul.f32 %v1662_v49, %v553_v53 }
 0x56e   :  { %v555_v55 = vadd.f32 %v1662_v49, %v554_v54 }
 0x570   :  { %v559_v59 = vsel %vm558_vm12, %v1662_v49, %v555_v55 }
 0x571   :  { %v564_v1 = vsel %vm561_vm13, %v563_v60, %v559_v59 }
 0x572   :  { %v587_v6 = vmul.f32 %v564_v1, %v2071_v62 }
 0x5ae   :  { %v601_v46 = vpop.permute.xlu2 %600 }
 0x5af   :  { %v603_v50 = vmul.f32 %v601_v46, %v583_v48 }
 0x5b1   :  { %605 = vrot.lane.b32.xlu1 %v603_v50, %s1816_s13 }
 0x5c5   :  { %v590_v61 = vpop.permute.xlu1 %589 }
 0x5c6   :  { %v592_v35 = vmul.f32 %v590_v61, %v564_v1 }
 0x5c8   :  { %594 = vrot.lane.b32.xlu0 %v592_v35, %s1816_s13 }
 0x623   :  { %v606_v47 = vpop.permute.xlu1 %605 }
 0x624   :  { %v2109_v3 = vadd.f32 %v606_v47, %v598_v37 }
 0x626   :  { %1663 = vtanh.f32 %v2109_v3 }
 0x62c   :  { %v1664_v4 = vpop.eup %1663 }
 0x62d   :  { %617 = vrot.lane.b32.xlu0 %v1664_v4, %s1816_s13 }
 0x63a   :  { %v595_v7 = vpop.permute.xlu0 %594 }
 0x63b   :  { %v2114_v9 = vadd.f32 %v595_v7, %v587_v6 }
 0x63d   :  { %1665 = vtanh.f32 %v2114_v9 }
 0x643   :  { %v1666_v11 = vpop.eup %1665 }
 0x644   :  { %611 = vrot.lane.b32.xlu2 %v1666_v11, %s1816_s13  ;;  %v820_v11 = vld [vmem:[#allocation2 + $0x8] sm:$0x3] }
 0x69e   :  { %v612_v12 = vpop.permute.xlu2 %611 }
 0x69f   :  { %v618_v63 = vpop.permute.xlu0 %617  ;;  %v614_v13 = vmul.f32 %v612_v12, %v564_v1 }
 0x6a0   :  { %v2118_v14 = vmul.f32 %v618_v63, %v583_v48  ;;  %v823_v63 = vld [vmem:[#allocation3 + $0x6] sm:$0x3] }
 0x6a1   :  { %622 = vrot.lane.b32.xlu1 %v614_v13, %s1822_s4 }
 0x6a2   :  { %633 = vrot.lane.b32.xlu2 %v2118_v14, %s1823_s12 }
 0x6fc   :  { %v634_v15 = vpop.permute.xlu2 %633 }
 0x713   :  { %v623_v62 = vpop.permute.xlu1 %622 }
 0x714   :  { %626 = vst.msk [vmem:[#allocation4 + $0x4] sm:$0x3] %vm347_vm9, %v623_v62  ;;  %v636_v18 = vsel %vm109_vm0, %v623_v62, %v634_v15 }
 0x715   :  { %1584 = vmatmul.msk.f32.vlgmr.msra.gmra.mxu0 %vm220_vm10, %v636_v18  ;;  %1585 = vmatmul.msk.f32.vlgmr.msra.gmra.mxu1 %vm220_vm10, %v636_v18 }
 0x716   :  { %1204 = vmatpush.msra.mxu0 %v1877_v0  ;;  %1224 = vmatpush.msra.mxu1 %v1905_v10 }
 0x718   :  { %1205 = vmatpush.msra.mxu0 %v1882_v2  ;;  %1225 = vmatpush.msra.mxu1 %v1912_v16  ;;  %v681_v2 = vld [vmem:[#allocation2 + $0x6] sm:$0x3] }
 0x71a   :  { %1206 = vmatpush.msra.mxu0 %v1891_v5  ;;  %1226 = vmatpush.msra.mxu1 %v1920_v19 }
 0x71c   :  { %1207 = vmatpush.msra.mxu0 %v1899_v8  ;;  %1227 = vmatpush.msra.mxu1 %v1923_v20  ;;  %v684_v8 = vld [vmem:[#allocation3 + $0x8] sm:$0x3] }
 0x71e   :  { %1208 = vmatpush.msra.mxu0 %v1914_v17  ;;  %1228 = vmatpush.msra.mxu1 %v1929_v23 }
 0x720   :  { %1209 = vmatpush.msra.mxu0 %v1925_v21  ;;  %1229 = vmatpush.msra.mxu1 %v1937_v28 }
 0x722   :  { %1210 = vmatpush.msra.mxu0 %v1932_v26  ;;  %1230 = vmatpush.msra.mxu1 %v1947_v30 }
 0x724   :  { %1211 = vmatpush.msra.mxu0 %v1940_v29  ;;  %1231 = vmatpush.msra.mxu1 %v1954_v32 }
 0x792   :  { %v657_v0 = vpop.f32.mrf.mxu0  ;;  %v677_v5 = vpop.f32.mrf.mxu1 }
 0x793   :  { %v682_v10 = vadd.f32 %v681_v2, %v657_v0  ;;  %v685_v16 = vadd.f32 %v684_v8, %v677_v5 }
 0x795   :  { %1667 = vtanh.f32 %v682_v10  ;;  %v1586_v20 = vmul.f32 -1.442695, %v682_v10  ;;  %v1587_v21 = vmul.f32 -1.442695, %v685_v16 }
 0x796   :  { %1669 = vtanh.f32 %v685_v16 }
 0x797   :  { %1671 = vpow2.f32 %v1586_v20 }
 0x798   :  { %1673 = vpow2.f32 %v1587_v21 }
 0x79b   :  { %v1668_v17 = vpop.eup %1667 }
 0x79c   :  { %v1670_v19 = vpop.eup %1669  ;;  %728 = vrot.lane.b32.xlu0 %v1668_v17, %s1816_s13 }
 0x79d   :  { %739 = vrot.lane.b32.xlu1 %v1670_v19, %s1816_s13  ;;  %v1672_v23 = vpop.eup %1671 }
 0x79e   :  { %v1674_v26 = vpop.eup %1673  ;;  %v689_v28 = vadd.f32 1.0, %v1672_v23 }
 0x79f   :  { %v708_v29 = vadd.f32 1.0, %v1674_v26 }
 0x7a0   :  { %1675 = vrcp.f32 %v689_v28  ;;  %v701_v38 = vand.u32 2147483648, %v689_v28  ;;  %vm695_vm1 = vweird.f32 %v689_v28  ;;  %v699_v40 = vand.u32 2147483647, %v689_v28 }
 0x7a1   :  { %1677 = vrcp.f32 %v708_v29  ;;  %v720_v39 = vand.u32 2147483648, %v708_v29  ;;  %vm714_vm2 = vweird.f32 %v708_v29  ;;  %v718_v41 = vand.u32 2147483647, %v708_v29 }
 0x7a2   :  { %v702_v44 = vor.u32 1.1754944e-38, %v701_v38  ;;  %vm700_vm5 = vcmp.eq.f32.partialorder %v699_v40, 8.507059e+37 }
 0x7a3   :  { %v721_v45 = vor.u32 1.1754944e-38, %v720_v39  ;;  %vm719_vm6 = vcmp.eq.f32.partialorder %v718_v41, 8.507059e+37 }
 0x7a6   :  { %v1676_v30 = vpop.eup %1675 }
 0x7a7   :  { %v1678_v32 = vpop.eup %1677  ;;  %v691_v22 = vmul.f32 %v1676_v30, %v689_v28  ;;  %vm696_vm14 = vweird.f32 %v1676_v30 }
 0x7a8   :  { %v710_v24 = vmul.f32 %v1678_v32, %v708_v29  ;;  %vm715_vm15 = vweird.f32 %v1678_v32  ;;  %vm697_vm3 = vmor %vm695_vm1, %vm696_vm14 }
 0x7a9   :  { %v692_v25 = vsub.f32 1.0, %v691_v22  ;;  %vm716_vm4 = vmor %vm714_vm2, %vm715_vm15 }
 0x7aa   :  { %v711_v27 = vsub.f32 1.0, %v710_v24 }
 0x7ab   :  { %v693_v31 = vmul.f32 %v1676_v30, %v692_v25 }
 0x7ac   :  { %v712_v33 = vmul.f32 %v1678_v32, %v711_v27 }
 0x7ad   :  { %v694_v34 = vadd.f32 %v1676_v30, %v693_v31 }
 0x7ae   :  { %v713_v36 = vadd.f32 %v1678_v32, %v712_v33 }
 0x7af   :  { %v698_v42 = vsel %vm697_vm3, %v1676_v30, %v694_v34 }
 0x7b0   :  { %v717_v43 = vsel %vm716_vm4, %v1678_v32, %v713_v36  ;;  %v703_v48 = vsel %vm700_vm5, %v702_v44, %v698_v42 }
 0x7b1   :  { %v722_v50 = vsel %vm719_vm6, %v721_v45, %v717_v43  ;;  %v726_v54 = vmul.f32 %v703_v48, %v2114_v9 }
 0x7b2   :  { %v737_v59 = vmul.f32 %v722_v50, %v2109_v3 }
 0x80e   :  { %v729_v46 = vpop.permute.xlu0 %728 }
 0x80f   :  { %v740_v49 = vpop.permute.xlu1 %739  ;;  %v731_v52 = vmul.f32 %v729_v46, %v703_v48 }
 0x810   :  { %v742_v53 = vmul.f32 %v740_v49, %v722_v50 }
 0x811   :  { %733 = vrot.lane.b32.xlu2 %v731_v52, %s1816_s13 }
 0x812   :  { %744 = vrot.lane.b32.xlu0 %v742_v53, %s1816_s13 }
 0x86b   :  { %v734_v55 = vpop.permute.xlu2 %733 }
 0x86c   :  { %v2148_v57 = vadd.f32 %v734_v55, %v726_v54 }
 0x86e   :  { %1679 = vtanh.f32 %v2148_v57 }
 0x874   :  { %v1680_v58 = vpop.eup %1679 }
 0x875   :  { %750 = vrot.lane.b32.xlu1 %v1680_v58, %s1816_s13 }
 0x884   :  { %v745_v60 = vpop.permute.xlu0 %744 }
 0x885   :  { %v2153_v61 = vadd.f32 %v745_v60, %v737_v59 }
 0x887   :  { %1681 = vtanh.f32 %v2153_v61 }
 0x88d   :  { %v1682_v1 = vpop.eup %1681 }
 0x88e   :  { %756 = vrot.lane.b32.xlu2 %v1682_v1, %s1816_s13 }
 0x8e7   :  { %v751_v35 = vpop.permute.xlu1 %750 }
 0x8e8   :  { %v757_v37 = vpop.permute.xlu2 %756  ;;  %v753_v47 = vmul.f32 %v751_v35, %v703_v48  ;;  %v959_v35 = vld [vmem:[#allocation2 + $0xa] sm:$0x3] }
 0x8e9   :  { %v2157_v4 = vmul.f32 %v757_v37, %v722_v50 }
 0x8ea   :  { %761 = vrot.lane.b32.xlu0 %v753_v47, %s1822_s4  ;;  %v962_v47 = vld [vmem:[#allocation3 + $0x4] sm:$0x3] }
 0x8eb   :  { %772 = vrot.lane.b32.xlu1 %v2157_v4, %s1823_s12 }
 0x95c   :  { %v762_v6 = vpop.permute.xlu0 %761 }
 0x95d   :  { %765 = vst.msk [vmem:[#allocation4 + $0x6] sm:$0x3] %vm347_vm9, %v762_v6  ;;  %v773_v3 = vpop.permute.xlu1 %772 }
 0x95e   :  { %v775_v7 = vsel %vm109_vm0, %v762_v6, %v773_v3 }
 0x95f   :  { %1588 = vmatmul.msk.f32.vlgmr.msra.gmra.mxu2 %vm220_vm10, %v775_v7  ;;  %1589 = vmatmul.msk.f32.vlgmr.msra.gmra.mxu3 %vm220_vm10, %v775_v7 }
 0x9e2   :  { %v796_v9 = vpop.f32.mrf.mxu2  ;;  %v816_v12 = vpop.f32.mrf.mxu3 }
 0x9e3   :  { %v821_v13 = vadd.f32 %v820_v11, %v796_v9  ;;  %v824_v15 = vadd.f32 %v823_v63, %v816_v12 }
 0x9e5   :  { %1683 = vtanh.f32 %v821_v13  ;;  %v1590_v0 = vmul.f32 -1.442695, %v821_v13  ;;  %v1591_v10 = vmul.f32 -1.442695, %v824_v15 }
 0x9e6   :  { %1685 = vtanh.f32 %v824_v15 }
 0x9e7   :  { %1687 = vpow2.f32 %v1590_v0 }
 0x9eb   :  { %v1684_v62 = vpop.eup %1683 }
 0x9ec   :  { %v1686_v18 = vpop.eup %1685  ;;  %867 = vrot.lane.b32.xlu2 %v1684_v62, %s1816_s13 }
 0x9ed   :  { %878 = vrot.lane.b32.xlu0 %v1686_v18, %s1816_s13  ;;  %v1688_v2 = vpop.eup %1687 }
 0x9ee   :  { %v828_v5 = vadd.f32 1.0, %v1688_v2 }
 0x9f0   :  { %1689 = vrcp.f32 %v828_v5  ;;  %v840_v26 = vand.u32 2147483648, %v828_v5  ;;  %vm834_vm8 = vweird.f32 %v828_v5  ;;  %v838_v28 = vand.u32 2147483647, %v828_v5 }
 0x9f1   :  { %1691 = vpow2.f32 %v1591_v10 }
 0x9f2   :  { %v841_v30 = vor.u32 1.1754944e-38, %v840_v26  ;;  %vm839_vm12 = vcmp.eq.f32.partialorder %v838_v28, 8.507059e+37 }
 0x9f6   :  { %v1690_v8 = vpop.eup %1689 }
 0x9f7   :  { %v830_v16 = vmul.f32 %v1690_v8, %v828_v5  ;;  %v1692_v20 = vpop.eup %1691  ;;  %vm835_vm7 = vweird.f32 %v1690_v8 }
 0x9f8   :  { %v847_v21 = vadd.f32 1.0, %v1692_v20  ;;  %vm836_vm11 = vmor %vm834_vm8, %vm835_vm7 }
 0x9f9   :  { %v831_v17 = vsub.f32 1.0, %v830_v16 }
 0x9fa   :  { %1693 = vrcp.f32 %v847_v21  ;;  %v859_v36 = vand.u32 2147483648, %v847_v21  ;;  %vm853_vm14 = vweird.f32 %v847_v21  ;;  %v857_v38 = vand.u32 2147483647, %v847_v21 }
 0x9fb   :  { %v832_v19 = vmul.f32 %v1690_v8, %v831_v17 }
 0x9fc   :  { %v860_v40 = vor.u32 1.1754944e-38, %v859_v36  ;;  %vm858_vm1 = vcmp.eq.f32.partialorder %v857_v38, 8.507059e+37 }
 0x9fd   :  { %v833_v23 = vadd.f32 %v1690_v8, %v832_v19 }
 0x9ff   :  { %v837_v29 = vsel %vm836_vm11, %v1690_v8, %v833_v23 }
 0xa00   :  { %v842_v22 = vsel %vm839_vm12, %v841_v30, %v837_v29  ;;  %v1694_v25 = vpop.eup %1693 }
 0xa01   :  { %v849_v27 = vmul.f32 %v1694_v25, %v847_v21  ;;  %vm854_vm13 = vweird.f32 %v1694_v25  ;;  %v865_v44 = vmul.f32 %v842_v22, %v2148_v57 }
 0xa02   :  { %vm855_vm15 = vmor %vm853_vm14, %vm854_vm13 }
 0xa03   :  { %v850_v31 = vsub.f32 1.0, %v849_v27 }
 0xa05   :  { %v851_v33 = vmul.f32 %v1694_v25, %v850_v31 }
 0xa07   :  { %v852_v34 = vadd.f32 %v1694_v25, %v851_v33 }
 0xa09   :  { %v856_v39 = vsel %vm855_vm15, %v1694_v25, %v852_v34 }
 0xa0a   :  { %v861_v42 = vsel %vm858_vm1, %v860_v40, %v856_v39 }
 0xa0b   :  { %v876_v45 = vmul.f32 %v861_v42, %v2153_v61 }
 0xa46   :  { %v868_v32 = vpop.permute.xlu2 %867 }
 0xa47   :  { %v870_v24 = vmul.f32 %v868_v32, %v842_v22 }
 0xa49   :  { %872 = vrot.lane.b32.xlu1 %v870_v24, %s1816_s13 }
 0xa5f   :  { %v879_v41 = vpop.permute.xlu0 %878 }
 0xa60   :  { %v881_v43 = vmul.f32 %v879_v41, %v861_v42 }
 0xa62   :  { %883 = vrot.lane.b32.xlu2 %v881_v43, %s1816_s13 }
 0xabb   :  { %v873_v46 = vpop.permute.xlu1 %872 }
 0xabc   :  { %v884_v48 = vpop.permute.xlu2 %883  ;;  %v2172_v49 = vadd.f32 %v873_v46, %v865_v44 }
 0xabd   :  { %v2174_v50 = vadd.f32 %v884_v48, %v876_v45 }
 0xabe   :  { %1695 = vtanh.f32 %v2172_v49 }
 0xabf   :  { %1697 = vtanh.f32 %v2174_v50 }
 0xac4   :  { %v1696_v52 = vpop.eup %1695 }
 0xac5   :  { %v1698_v53 = vpop.eup %1697  ;;  %889 = vrot.lane.b32.xlu0 %v1696_v52, %s1816_s13 }
 0xac6   :  { %895 = vrot.lane.b32.xlu1 %v1698_v53, %s1816_s13 }
 0xb37   :  { %v890_v54 = vpop.permute.xlu0 %889 }
 0xb38   :  { %v896_v55 = vpop.permute.xlu1 %895  ;;  %v892_v57 = vmul.f32 %v890_v54, %v842_v22 }
 0xb39   :  { %v2180_v58 = vmul.f32 %v896_v55, %v861_v42  ;;  %v1098_v55 = vld [vmem:[#allocation2 + $0xc] sm:$0x3] }
 0xb3a   :  { %900 = vrot.lane.b32.xlu2 %v892_v57, %s1822_s4 }
 0xb3b   :  { %911 = vrot.lane.b32.xlu0 %v2180_v58, %s1823_s12 }
 0xb94   :  { %v901_v59 = vpop.permute.xlu2 %900 }
 0xb95   :  { %904 = vst.msk [vmem:[#allocation4 + $0x8] sm:$0x3] %vm347_vm9, %v901_v59 }
 0xbad   :  { %v912_v60 = vpop.permute.xlu0 %911 }
 0xbae   :  { %v914_v61 = vsel %vm109_vm0, %v901_v59, %v912_v60  ;;  %v1101_v59 = vld [vmem:[#allocation3 + $0x2] sm:$0x3] }
 0xbaf   :  { %1592 = vmatmul.msk.f32.vlgmr.msrb.gmra.mxu0 %vm220_vm10, %v914_v61  ;;  %1593 = vmatmul.msk.f32.vlgmr.msrb.gmra.mxu1 %vm220_vm10, %v914_v61 }
 0xc2c   :  { %v935_v1 = vpop.f32.mrf.mxu0  ;;  %v955_v37 = vpop.f32.mrf.mxu1 }
 0xc2d   :  { %v960_v6 = vadd.f32 %v959_v35, %v935_v1  ;;  %v963_v3 = vadd.f32 %v962_v47, %v955_v37 }
 0xc2f   :  { %1699 = vtanh.f32 %v960_v6  ;;  %v1595_v11 = vmul.f32 -1.442695, %v963_v3  ;;  %v1594_v15 = vmul.f32 -1.442695, %v960_v6 }
 0xc30   :  { %1701 = vtanh.f32 %v963_v3 }
 0xc31   :  { %1703 = vpow2.f32 %v1595_v11 }
 0xc35   :  { %v1700_v7 = vpop.eup %1699 }
 0xc36   :  { %v1702_v9 = vpop.eup %1701  ;;  %1006 = vrot.lane.b32.xlu1 %v1700_v7, %s1816_s13 }
 0xc37   :  { %1017 = vrot.lane.b32.xlu2 %v1702_v9, %s1816_s13  ;;  %v1704_v12 = vpop.eup %1703 }
 0xc38   :  { %v986_v63 = vadd.f32 1.0, %v1704_v12 }
 0xc3a   :  { %1705 = vrcp.f32 %v986_v63  ;;  %v998_v10 = vand.u32 2147483648, %v986_v63  ;;  %vm992_vm3 = vweird.f32 %v986_v63  ;;  %v996_v16 = vand.u32 2147483647, %v986_v63 }
 0xc3b   :  { %1707 = vpow2.f32 %v1594_v15 }
 0xc3c   :  { %v999_v19 = vor.u32 1.1754944e-38, %v998_v10  ;;  %vm997_vm5 = vcmp.eq.f32.partialorder %v996_v16, 8.507059e+37 }
 0xc40   :  { %v1706_v13 = vpop.eup %1705 }
 0xc41   :  { %v988_v62 = vmul.f32 %v1706_v13, %v986_v63  ;;  %v1708_v0 = vpop.eup %1707  ;;  %vm993_vm2 = vweird.f32 %v1706_v13 }
 0xc42   :  { %v967_v5 = vadd.f32 1.0, %v1708_v0  ;;  %vm994_vm4 = vmor %vm992_vm3, %vm993_vm2 }
 0xc43   :  { %v989_v18 = vsub.f32 1.0, %v988_v62 }
 0xc44   :  { %1709 = vrcp.f32 %v967_v5  ;;  %v979_v22 = vand.u32 2147483648, %v967_v5  ;;  %vm973_vm7 = vweird.f32 %v967_v5  ;;  %v977_v24 = vand.u32 2147483647, %v967_v5 }
 0xc45   :  { %v990_v2 = vmul.f32 %v1706_v13, %v989_v18 }
 0xc46   :  { %v980_v27 = vor.u32 1.1754944e-38, %v979_v22  ;;  %vm978_vm11 = vcmp.eq.f32.partialorder %v977_v24, 8.507059e+37 }
 0xc47   :  { %v991_v8 = vadd.f32 %v1706_v13, %v990_v2 }
 0xc49   :  { %v995_v17 = vsel %vm994_vm4, %v1706_v13, %v991_v8 }
 0xc4a   :  { %v1000_v21 = vsel %vm997_vm5, %v999_v19, %v995_v17  ;;  %v1710_v23 = vpop.eup %1709 }
 0xc4b   :  { %v969_v28 = vmul.f32 %v1710_v23, %v967_v5  ;;  %vm974_vm6 = vweird.f32 %v1710_v23  ;;  %v1015_v36 = vmul.f32 %v1000_v21, %v2174_v50 }
 0xc4c   :  { %vm975_vm8 = vmor %vm973_vm7, %vm974_vm6 }
 0xc4d   :  { %v970_v29 = vsub.f32 1.0, %v969_v28 }
 0xc4f   :  { %v971_v30 = vmul.f32 %v1710_v23, %v970_v29 }
 0xc51   :  { %v972_v32 = vadd.f32 %v1710_v23, %v971_v30 }
 0xc53   :  { %v976_v25 = vsel %vm975_vm8, %v1710_v23, %v972_v32 }
 0xc54   :  { %v981_v33 = vsel %vm978_vm11, %v980_v27, %v976_v25 }
 0xc55   :  { %v1004_v41 = vmul.f32 %v981_v33, %v2172_v49 }
 0xc91   :  { %v1018_v20 = vpop.permute.xlu2 %1017 }
 0xc92   :  { %v1020_v26 = vmul.f32 %v1018_v20, %v1000_v21 }
 0xc94   :  { %1022 = vrot.lane.b32.xlu1 %v1020_v26, %s1816_s13 }
 0xca8   :  { %v1007_v31 = vpop.permute.xlu1 %1006 }
 0xca9   :  { %v1009_v34 = vmul.f32 %v1007_v31, %v981_v33 }
 0xcab   :  { %1011 = vrot.lane.b32.xlu0 %v1009_v34, %s1816_s13 }
 0xd06   :  { %v1023_v38 = vpop.permute.xlu1 %1022 }
 0xd07   :  { %v2194_v39 = vadd.f32 %v1023_v38, %v1015_v36 }
 0xd09   :  { %1711 = vtanh.f32 %v2194_v39 }
 0xd0f   :  { %v1712_v40 = vpop.eup %1711 }
 0xd10   :  { %1034 = vrot.lane.b32.xlu0 %v1712_v40, %s1816_s13 }
 0xd1d   :  { %v1012_v42 = vpop.permute.xlu0 %1011 }
 0xd1e   :  { %v2199_v43 = vadd.f32 %v1012_v42, %v1004_v41 }
 0xd20   :  { %1713 = vtanh.f32 %v2199_v43 }
 0xd26   :  { %v1714_v44 = vpop.eup %1713 }
 0xd27   :  { %1028 = vrot.lane.b32.xlu2 %v1714_v44, %s1816_s13 }
 0xd81   :  { %v1029_v45 = vpop.permute.xlu2 %1028 }
 0xd82   :  { %v1035_v46 = vpop.permute.xlu0 %1034  ;;  %v1031_v48 = vmul.f32 %v1029_v45, %v981_v33 }
 0xd83   :  { %v2203_v50 = vmul.f32 %v1035_v46, %v1000_v21 }
 0xd84   :  { %1039 = vrot.lane.b32.xlu1 %v1031_v48, %s1822_s4  ;;  %v1237_v48 = vld [vmem:[#allocation2 + $0xe] sm:$0x3] }
 0xd85   :  { %1050 = vrot.lane.b32.xlu2 %v2203_v50, %s1823_s12 }
 0xddf   :  { %v1051_v52 = vpop.permute.xlu2 %1050 }
 0xdf6   :  { %v1040_v49 = vpop.permute.xlu1 %1039 }
 0xdf7   :  { %1043 = vst.msk [vmem:[#allocation4 + $0xa] sm:$0x3] %vm347_vm9, %v1040_v49  ;;  %v1053_v53 = vsel %vm109_vm0, %v1040_v49, %v1051_v52  ;;  %v1239_v49 = vld [vmem:[#allocation3] sm:$0x3] }
 0xdf8   :  { %1596 = vmatmul.msk.f32.vlgmr.msrb.gmra.mxu2 %vm220_vm10, %v1053_v53  ;;  %1597 = vmatmul.msk.f32.vlgmr.msrb.gmra.mxu3 %vm220_vm10, %v1053_v53 }
 0xe7b   :  { %v1074_v54 = vpop.f32.mrf.mxu2  ;;  %v1094_v57 = vpop.f32.mrf.mxu3 }
 0xe7c   :  { %v1099_v60 = vadd.f32 %v1098_v55, %v1074_v54  ;;  %v1102_v61 = vadd.f32 %v1101_v59, %v1094_v57 }
 0xe7e   :  { %1715 = vtanh.f32 %v1099_v60  ;;  %v1598_v37 = vmul.f32 -1.442695, %v1099_v60  ;;  %v1599_v47 = vmul.f32 -1.442695, %v1102_v61 }
 0xe7f   :  { %1717 = vtanh.f32 %v1102_v61 }
 0xe80   :  { %1719 = vpow2.f32 %v1598_v37 }
 0xe81   :  { %1721 = vpow2.f32 %v1599_v47 }
 0xe84   :  { %v1716_v1 = vpop.eup %1715 }
 0xe85   :  { %v1718_v35 = vpop.eup %1717  ;;  %1145 = vrot.lane.b32.xlu0 %v1716_v1, %s1816_s13 }
 0xe86   :  { %1156 = vrot.lane.b32.xlu1 %v1718_v35, %s1816_s13  ;;  %v1720_v6 = vpop.eup %1719 }
 0xe87   :  { %v1722_v3 = vpop.eup %1721  ;;  %v1106_v7 = vadd.f32 1.0, %v1720_v6 }
 0xe88   :  { %v1125_v9 = vadd.f32 1.0, %v1722_v3 }
 0xe89   :  { %1723 = vrcp.f32 %v1106_v7  ;;  %v1118_v8 = vand.u32 2147483648, %v1106_v7  ;;  %vm1112_vm14 = vweird.f32 %v1106_v7  ;;  %v1116_v16 = vand.u32 2147483647, %v1106_v7 }
 0xe8a   :  { %1725 = vrcp.f32 %v1125_v9  ;;  %v1137_v10 = vand.u32 2147483648, %v1125_v9  ;;  %vm1131_vm15 = vweird.f32 %v1125_v9  ;;  %v1135_v17 = vand.u32 2147483647, %v1125_v9 }
 0xe8b   :  { %v1119_v21 = vor.u32 1.1754944e-38, %v1118_v8  ;;  %vm1117_vm3 = vcmp.eq.f32.partialorder %v1116_v16, 8.507059e+37 }
 0xe8c   :  { %v1138_v23 = vor.u32 1.1754944e-38, %v1137_v10  ;;  %vm1136_vm4 = vcmp.eq.f32.partialorder %v1135_v17, 8.507059e+37 }
 0xe8f   :  { %v1724_v11 = vpop.eup %1723 }
 0xe90   :  { %v1726_v12 = vpop.eup %1725  ;;  %v1108_v63 = vmul.f32 %v1724_v11, %v1106_v7  ;;  %vm1113_vm12 = vweird.f32 %v1724_v11 }
 0xe91   :  { %v1127_v13 = vmul.f32 %v1726_v12, %v1125_v9  ;;  %vm1132_vm13 = vweird.f32 %v1726_v12  ;;  %vm1114_vm1 = vmor %vm1112_vm14, %vm1113_vm12  ;;  %vm1549_vm14 = vcmask 1042434  }
 0xe92   :  { %v1109_v15 = vsub.f32 1.0, %v1108_v63  ;;  %vm1133_vm2 = vmor %vm1131_vm15, %vm1132_vm13  ;;  %vm1551_vm15 = vcmask 1043459  }
 0xe93   :  { %v1128_v62 = vsub.f32 1.0, %v1127_v13 }
 0xe94   :  { %v1110_v18 = vmul.f32 %v1724_v11, %v1109_v15 }
 0xe95   :  { %v1129_v0 = vmul.f32 %v1726_v12, %v1128_v62 }
 0xe96   :  { %v1111_v2 = vadd.f32 %v1724_v11, %v1110_v18 }
 0xe97   :  { %v1130_v5 = vadd.f32 %v1726_v12, %v1129_v0 }
 0xe98   :  { %v1115_v19 = vsel %vm1114_vm1, %v1724_v11, %v1111_v2  ;;  %vm1553_vm1 = vcmask 1044484  }
 0xe99   :  { %v1134_v20 = vsel %vm1133_vm2, %v1726_v12, %v1130_v5  ;;  %v1120_v28 = vsel %vm1117_vm3, %v1119_v21, %v1115_v19  ;;  %vm1555_vm2 = vcmask 1045509   ;;  %vm1557_vm3 = vcmask 1046534  }
 0xe9a   :  { %v1139_v30 = vsel %vm1136_vm4, %v1138_v23, %v1134_v20  ;;  %v1143_v24 = vmul.f32 %v1120_v28, %v2199_v43  ;;  %vm1559_vm4 = vcmask 1047559  }
 0xe9b   :  { %v1154_v33 = vmul.f32 %v1139_v30, %v2194_v39 }
 0xef7   :  { %v1146_v26 = vpop.permute.xlu0 %1145 }
 0xef8   :  { %v1157_v29 = vpop.permute.xlu1 %1156  ;;  %v1148_v32 = vmul.f32 %v1146_v26, %v1120_v28 }
 0xef9   :  { %v1159_v22 = vmul.f32 %v1157_v29, %v1139_v30 }
 0xefa   :  { %1150 = vrot.lane.b32.xlu2 %v1148_v32, %s1816_s13 }
 0xefb   :  { %1161 = vrot.lane.b32.xlu0 %v1159_v22, %s1816_s13 }
 0xf54   :  { %v1151_v25 = vpop.permute.xlu2 %1150 }
 0xf55   :  { %v2217_v27 = vadd.f32 %v1151_v25, %v1143_v24 }
 0xf57   :  { %1727 = vtanh.f32 %v2217_v27 }
 0xf5d   :  { %v1728_v31 = vpop.eup %1727 }
 0xf5e   :  { %1167 = vrot.lane.b32.xlu1 %v1728_v31, %s1816_s13 }
 0xf6d   :  { %v1162_v34 = vpop.permute.xlu0 %1161 }
 0xf6e   :  { %v2222_v36 = vadd.f32 %v1162_v34, %v1154_v33 }
 0xf70   :  { %1729 = vtanh.f32 %v2222_v36 }
 0xf76   :  { %v1730_v38 = vpop.eup %1729 }
 0xf77   :  { %1173 = vrot.lane.b32.xlu2 %v1730_v38, %s1816_s13 }
 0xfd0   :  { %v1168_v40 = vpop.permute.xlu1 %1167 }
 0xfd1   :  { %v1174_v41 = vpop.permute.xlu2 %1173  ;;  %v1170_v42 = vmul.f32 %v1168_v40, %v1120_v28 }
 0xfd2   :  { %v2226_v43 = vmul.f32 %v1174_v41, %v1139_v30 }
 0xfd3   :  { %1178 = vrot.lane.b32.xlu0 %v1170_v42, %s1822_s4 }
 0xfd4   :  { %1189 = vrot.lane.b32.xlu1 %v2226_v43, %s1823_s12 }
0x1045   :  { %v1179_v44 = vpop.permute.xlu0 %1178 }
0x1046   :  { %1182 = vst.msk [vmem:[#allocation4 + $0xc] sm:$0x3] %vm347_vm9, %v1179_v44  ;;  %v1190_v39 = vpop.permute.xlu1 %1189 }
0x1047   :  { %v1192_v45 = vsel %vm109_vm0, %v1179_v44, %v1190_v39 }
0x1048   :  { %1600 = vmatmul.msk.f32.vlgmr.msra.gmra.mxu0 %vm220_vm10, %v1192_v45  ;;  %1601 = vmatmul.msk.f32.vlgmr.msra.gmra.mxu1 %vm220_vm10, %v1192_v45  ;;  %v1332_v45 = vld [vmem:[%s2319_s3 + $0x30] sm:$0xff] }
0x10c5   :  { %v1213_v46 = vpop.f32.mrf.mxu0  ;;  %v1233_v52 = vpop.f32.mrf.mxu1 }
0x10c6   :  { %v1238_v53 = vadd.f32 %v1237_v48, %v1213_v46  ;;  %v1240_v54 = vadd.f32 %v1239_v49, %v1233_v52  ;;  %v1331_v46 = vld [vmem:[%s2319_s3 + $0x28] sm:$0xff]  ;;  %v1330_v48 = vld [vmem:[%s2319_s3 + $0x20] sm:$0xff]  ;;  %v1329_v52 = vld [vmem:[%s2319_s3 + $0x18] sm:$0xff] }
0x10c7   :  { %v1328_v49 = vld [vmem:[%s2319_s3 + $0x10] sm:$0xff]  ;;  %1443 = vmatpush.msra.mxu3 %v1329_v52  ;;  %v1520_v52 = vstv %s2323_s7 }
0x10c8   :  { %1731 = vtanh.f32 %v1238_v53  ;;  %v1603_v59 = vmul.f32 -1.442695, %v1240_v54  ;;  %v1602_v35 = vmul.f32 -1.442695, %v1238_v53  ;;  %v1327_v53 = vld [vmem:[%s2319_s3 + $0x8] sm:$0xff] }
0x10c9   :  { %1733 = vtanh.f32 %v1240_v54  ;;  %1444 = vmatpush.msra.mxu3 %v1328_v49  ;;  %v1326_v54 = vld [vmem:[%s2319_s3] sm:$0xff] }
0x10ca   :  { %1735 = vpow2.f32 %v1603_v59 }
0x10cb   :  { %1445 = vmatpush.msra.mxu3 %v1327_v53 }
0x10cd   :  { %1446 = vmatpush.msra.mxu3 %v1326_v54 }
0x10ce   :  { %v1732_v55 = vpop.eup %1731 }
0x10cf   :  { %v1734_v57 = vpop.eup %1733  ;;  %1283 = vrot.lane.b32.xlu0 %v1732_v55, %s1816_s13 }
0x10d0   :  { %1294 = vrot.lane.b32.xlu2 %v1734_v57, %s1816_s13  ;;  %v1736_v60 = vpop.eup %1735 }
0x10d1   :  { %v1263_v61 = vadd.f32 1.0, %v1736_v60  ;;  %v1334_v60 = vld [vmem:[#allocation4] sm:$0x3] }
0x10d3   :  { %1737 = vrcp.f32 %v1263_v61  ;;  %v1275_v11 = vand.u32 2147483648, %v1263_v61  ;;  %vm1269_vm5 = vweird.f32 %v1263_v61  ;;  %v1273_v12 = vand.u32 2147483647, %v1263_v61 }
0x10d4   :  { %1739 = vpow2.f32 %v1602_v35  ;;  %v1335_v35 = vld [vmem:[#allocation4 + $0x2] sm:$0x3] }
0x10d5   :  { %v1276_v13 = vor.u32 1.1754944e-38, %v1275_v11  ;;  %vm1274_vm7 = vcmp.eq.f32.partialorder %v1273_v12, 8.507059e+37  ;;  %v1340_v11 = vld [vmem:[#allocation4 + $0xc] sm:$0x3] }
0x10d9   :  { %v1738_v1 = vpop.eup %1737 }
0x10da   :  { %v1265_v37 = vmul.f32 %v1738_v1, %v1263_v61  ;;  %v1740_v6 = vpop.eup %1739  ;;  %vm1270_vm10 = vweird.f32 %v1738_v1 }
0x10db   :  { %v1244_v7 = vadd.f32 1.0, %v1740_v6  ;;  %vm1271_vm6 = vmor %vm1269_vm5, %vm1270_vm10  ;;  %vm1562_vm10 = vcmask 15360  }
0x10dc   :  { %v1266_v47 = vsub.f32 1.0, %v1265_v37  ;;  %v1336_v37 = vld [vmem:[#allocation4 + $0x4] sm:$0x3] }
0x10dd   :  { %1741 = vrcp.f32 %v1244_v7  ;;  %v1256_v16 = vand.u32 2147483648, %v1244_v7  ;;  %vm1250_vm11 = vweird.f32 %v1244_v7  ;;  %v1254_v17 = vand.u32 2147483647, %v1244_v7 }
0x10de   :  { %v1267_v3 = vmul.f32 %v1738_v1, %v1266_v47  ;;  %v1337_v47 = vld [vmem:[#allocation4 + $0x6] sm:$0x3] }
0x10df   :  { %v1257_v20 = vor.u32 1.1754944e-38, %v1256_v16  ;;  %vm1255_vm13 = vcmp.eq.f32.partialorder %v1254_v17, 8.507059e+37  ;;  %v1618_v16 = vld [vmem:[%s2322_s6] ss:$0 sm:$0xff] }
0x10e0   :  { %v1268_v9 = vadd.f32 %v1738_v1, %v1267_v3  ;;  %v1338_v3 = vld [vmem:[#allocation4 + $0x8] sm:$0x3] }
0x10e2   :  { %v1272_v63 = vsel %vm1271_vm6, %v1738_v1, %v1268_v9  ;;  %v1339_v9 = vld [vmem:[#allocation4 + $0xa] sm:$0x3] }
0x10e3   :  { %v1277_v62 = vsel %vm1274_vm7, %v1276_v13, %v1272_v63  ;;  %v1742_v18 = vpop.eup %1741 }
0x10e4   :  { %v1246_v2 = vmul.f32 %v1742_v18, %v1244_v7  ;;  %vm1251_vm8 = vweird.f32 %v1742_v18  ;;  %v1292_v29 = vmul.f32 %v1277_v62, %v2222_v36 }
0x10e5   :  { %vm1252_vm12 = vmor %vm1250_vm11, %vm1251_vm8 }
0x10e6   :  { %v1247_v5 = vsub.f32 1.0, %v1246_v2 }
0x10e8   :  { %v1248_v8 = vmul.f32 %v1742_v18, %v1247_v5 }
0x10ea   :  { %v1249_v10 = vadd.f32 %v1742_v18, %v1248_v8 }
0x10ec   :  { %v1253_v19 = vsel %vm1252_vm12, %v1742_v18, %v1249_v10 }
0x10ed   :  { %v1258_v23 = vsel %vm1255_vm13, %v1257_v20, %v1253_v19 }
0x10ee   :  { %v1281_v28 = vmul.f32 %v1258_v23, %v2217_v27 }
0x112a   :  { %v1295_v15 = vpop.permute.xlu2 %1294 }
0x112b   :  { %v1297_v0 = vmul.f32 %v1295_v15, %v1277_v62  ;;  %v1617_v15 = vld [vmem:[%s2321_s5] ss:$0 sm:$0xff] }
0x112d   :  { %1299 = vrot.lane.b32.xlu1 %v1297_v0, %s1816_s13 }
0x1141   :  { %v1284_v21 = vpop.permute.xlu0 %1283 }
0x1142   :  { %v1286_v26 = vmul.f32 %v1284_v21, %v1258_v23 }
0x1144   :  { %1288 = vrot.lane.b32.xlu2 %v1286_v26, %s1816_s13 }
0x114c   :  { %906 = vrot.lane.b32.xlu2 %v2180_v58, %s1822_s4 }
0x119e   :  { %v1289_v30 = vpop.permute.xlu2 %1288 }
0x119f   :  { %v1300_v32 = vpop.permute.xlu1 %1299  ;;  %v1291_v22 = vadd.f32 %v1289_v30, %v1281_v28 }
0x11a0   :  { %v1302_v24 = vadd.f32 %v1300_v32, %v1292_v29 }
0x11a1   :  { %1743 = vtanh.f32 %v1291_v22 }
0x11a2   :  { %1745 = vtanh.f32 %v1302_v24 }
0x11a6   :  { %v907_v25 = vpop.permute.xlu2 %906 }
0x11a7   :  { %v1744_v31 = vpop.eup %1743  ;;  %910 = vst.msk [vmem:[#allocation5 + $0x6] sm:$0x3] %vm347_vm9, %v907_v25 }
0x11a8   :  { %v1746_v33 = vpop.eup %1745  ;;  %1305 = vrot.lane.b32.xlu1 %v1744_v31, %s1816_s13 }
0x11a9   :  { %1311 = vrot.lane.b32.xlu0 %v1746_v33, %s1816_s13 }
0x11ae   :  { %v1345_v58 = vld [vmem:[#allocation5 + $0x6] sm:$0x3] }
0x11af   :  { %1364 = vst [vmem:[#allocation1 + $0x3] ss:$4 sm:$0xff] %v1345_v58 }
0x11b0   :  { %1184 = vrot.lane.b32.xlu1 %v2226_v43, %s1822_s4 }
0x11b1   :  { %1045 = vrot.lane.b32.xlu0 %v2203_v50, %s1822_s4 }
0x11b8   :  { %489 = vrot.lane.b32.xlu1 %v2079_v51, %s1822_s4 }
0x11b9   :  { %350 = vrot.lane.b32.xlu0 %v2039_v56, %s1822_s4 }
0x11c1   :  { %767 = vrot.lane.b32.xlu0 %v2157_v4, %s1822_s4 }
0x121a   :  { %v1306_v27 = vpop.permute.xlu1 %1305 }
0x121b   :  { %v1312_v34 = vpop.permute.xlu0 %1311  ;;  %v1308_v36 = vmul.f32 %v1306_v27, %v1258_v23 }
0x121c   :  { %v1314_v38 = vmul.f32 %v1312_v34, %v1277_v62 }
0x121d   :  { %1316 = vrot.lane.b32.xlu1 %v1308_v36, %s1822_s4 }
0x121e   :  { %1322 = vrot.lane.b32.xlu2 %v1314_v38, %s1822_s4 }
0x1222   :  { %v1185_v40 = vpop.permute.xlu1 %1184 }
0x1223   :  { %v1046_v41 = vpop.permute.xlu0 %1045  ;;  %1188 = vst.msk [vmem:[#allocation5 + $0x2] sm:$0x3] %vm347_vm9, %v1185_v40 }
0x1224   :  { %1049 = vst.msk [vmem:[#allocation5 + $0x4] sm:$0x3] %vm347_vm9, %v1046_v41 }
0x1226   :  { %628 = vrot.lane.b32.xlu2 %v2118_v14, %s1822_s4  ;;  %v1333_v14 = vld [vmem:[%s2319_s3 + $0x38] sm:$0xff] }
0x1227   :  { %1391 = vmatpush.msra.mxu2 %v1333_v14 }
0x1229   :  { %1392 = vmatpush.msra.mxu2 %v1332_v45 }
0x122a   :  { %v490_v56 = vpop.permute.xlu1 %489  ;;  %v1343_v51 = vld [vmem:[#allocation5 + $0x2] sm:$0x3] }
0x122b   :  { %v351_v4 = vpop.permute.xlu0 %350  ;;  %493 = vst.msk [vmem:[#allocation5 + $0xc] sm:$0x3] %vm347_vm9, %v490_v56  ;;  %v1344_v50 = vld [vmem:[#allocation5 + $0x4] sm:$0x3]  ;;  %1393 = vmatpush.msra.mxu2 %v1331_v46 }
0x122c   :  { %354 = vst.msk [vmem:[#allocation5 + $0xe] sm:$0x3] %vm347_vm9, %v351_v4 }
0x122d   :  { %1360 = vst [vmem:[#allocation1 + $0x1] ss:$4 sm:$0xff] %v1343_v51  ;;  %1394 = vmatpush.msra.mxu2 %v1330_v48  ;;  %v1537_v48 = vlaneseq }
0x122e   :  { %1362 = vst [vmem:[#allocation1 + $0x2] ss:$4 sm:$0xff] %v1344_v50 }
0x1232   :  { %v1348_v42 = vld [vmem:[#allocation5 + $0xc] sm:$0x3] }
0x1233   :  { %v768_v43 = vpop.permute.xlu0 %767  ;;  %v1349_v44 = vld [vmem:[#allocation5 + $0xe] sm:$0x3]  ;;  %1370 = vst [vmem:[#allocation1 + $0x22] ss:$4 sm:$0xff] %v1348_v42 }
0x1234   :  { %771 = vst.msk [vmem:[#allocation5 + $0x8] sm:$0x3] %vm347_vm9, %v768_v43 }
0x1235   :  { %1372 = vst [vmem:[#allocation1 + $0x23] ss:$4 sm:$0xff] %v1349_v44 }
0x123b   :  { %v1346_v39 = vld [vmem:[#allocation5 + $0x8] sm:$0x3] }
0x123c   :  { %1366 = vst [vmem:[#allocation1 + $0x20] ss:$4 sm:$0xff] %v1346_v39 }
0x1278   :  { %v1323_v55 = vpop.permute.xlu2 %1322 }
0x1279   :  { %1325 = vst.msk [vmem:[#allocation5] sm:$0x3] %vm347_vm9, %v1323_v55  ;;  %v1538_v55 = vand.u32 127, %v1537_v48 }
0x1280   :  { %v629_v57 = vpop.permute.xlu2 %628  ;;  %v1342_v59 = vld [vmem:[#allocation5] sm:$0x3] }
0x1281   :  { %632 = vst.msk [vmem:[#allocation5 + $0xa] sm:$0x3] %vm347_vm9, %v629_v57 }
0x1282   :  { %1358 = vst [vmem:[#allocation1] ss:$4 sm:$0xff] %v1342_v59 }
0x1288   :  { %v1347_v61 = vld [vmem:[#allocation5 + $0xa] sm:$0x3] }
0x1289   :  { %v1373_v1 = vld.sshfl [vmem:[#allocation1] sm:$0xff pattern:$0x73625140]  ;;  %1368 = vst [vmem:[#allocation1 + $0x21] ss:$4 sm:$0xff] %v1347_v61 }
0x128a   :  { %1604 = vmatmul.msk.f32.vlgmr.msra.gmra.mxu2 %vm109_vm0, %v1373_v1  ;;  %1410 = vst [vmem:[#allocation1] ss:$4 sm:$0xff] %v1334_v60 }
0x128b   :  { %1412 = vst [vmem:[#allocation1 + $0x1] ss:$4 sm:$0xff] %v1335_v35 }
0x128c   :  { %1414 = vst [vmem:[#allocation1 + $0x2] ss:$4 sm:$0xff] %v1336_v37 }
0x128d   :  { %1416 = vst [vmem:[#allocation1 + $0x3] ss:$4 sm:$0xff] %v1337_v47 }
0x128f   :  { %v1317_v6 = vpop.permute.xlu1 %1316 }
0x1290   :  { %1320 = vst.msk [vmem:[#allocation4 + $0xe] sm:$0x3] %vm347_vm9, %v1317_v6  ;;  %v1374_v7 = vld.sshfl [vmem:[#allocation1 + $0x20] sm:$0xff pattern:$0x73625140]  ;;  %vm1547_vm9 = vcmask 1041409  }
0x1291   :  { %1418 = vst [vmem:[#allocation1 + $0x20] ss:$4 sm:$0xff] %v1338_v3 }
0x1292   :  { %1605 = vmatmul.msk.f32.gmra.mxu2 %vm109_vm0, %v1374_v7  ;;  %1420 = vst [vmem:[#allocation1 + $0x21] ss:$4 sm:$0xff] %v1339_v9 }
0x1293   :  { %1422 = vst [vmem:[#allocation1 + $0x22] ss:$4 sm:$0xff] %v1340_v11 }
0x1294   :  { %v1425_v12 = vld.sshfl [vmem:[#allocation1] sm:$0xff pattern:$0x73625140] }
0x1295   :  { %1606 = vmatmul.msk.f32.vlgmr.msra.gmra.mxu3 %vm109_vm0, %v1425_v12 }
0x1297   :  { %v1341_v63 = vld [vmem:[#allocation4 + $0xe] sm:$0x3] }
0x1298   :  { %1424 = vst [vmem:[#allocation1 + $0x23] ss:$4 sm:$0xff] %v1341_v63 }
0x129f   :  { %v1426_v13 = vld.sshfl [vmem:[#allocation1 + $0x20] sm:$0xff pattern:$0x73625140] }
0x12a0   :  { %1607 = vmatmul.msk.f32.gmra.mxu3 %vm109_vm0, %v1426_v13  ;;  %vm1494_vm0 = vcmask 58368  }
0x130d   :  { %v1396_v62 = vpop.f32.mrf.mxu2 }
0x1315   :  { %v1399_v19 = vpop.f32.mrf.mxu2 }
0x1318   :  { %v1448_v18 = vpop.f32.mrf.mxu3 }
0x1319   :  { %v1449_v0 = vadd.f32 %v1448_v18, %v1396_v62 }
0x131b   :  { %v1458_v2 = vadd.f32 %v1617_v15, %v1449_v0 }
0x131d   :  { %1747 = vtanh.f32 %v1458_v2  ;;  %v1463_v5 = vrot.slane %v1458_v2, 4  ;;  %v1462_v8 = vrot.slane %v1458_v2, 2  ;;  %v1464_v10 = vrot.slane %v1458_v2, 6 }
0x131f   :  { %1749 = vtanh.f32 %v1463_v5 }
0x1320   :  { %1751 = vtanh.f32 %v1462_v8 }
0x1321   :  { %1753 = vtanh.f32 %v1464_v10 }
0x1323   :  { %v1748_v17 = vpop.eup %1747  ;;  %v1451_v20 = vpop.f32.mrf.mxu3 }
0x1324   :  { %v1486_v21 = vmul.f32 %v1748_v17, %v1618_v16  ;;  %v1452_v23 = vadd.f32 %v1451_v20, %v1399_v19 }
0x1325   :  { %v1750_v26 = vpop.eup %1749 }
0x1326   :  { %v1752_v28 = vpop.eup %1751  ;;  %v1495_v29 = vsel %vm1494_vm0, %v1486_v21, 0.0  ;;  %v1459_v30 = vadd.f32 %v1617_v15, %v1452_v23  ;;  %v1488_v32 = vmul.f32 %v1750_v26, %v1618_v16 }
0x1327   :  { %v1754_v22 = vpop.eup %1753  ;;  %1496 = vadd.xlane.f32.xlu2 %v1495_v29  ;;  %v1487_v24 = vmul.f32 %v1752_v28, %v1618_v16 }
0x1328   :  { %v1501_v25 = vsel %vm1494_vm0, %v1488_v32, 0.0  ;;  %1755 = vtanh.f32 %v1459_v30  ;;  %v1466_v31 = vrot.slane %v1459_v30, 4  ;;  %v1465_v58 = vrot.slane %v1459_v30, 2 }
0x1329   :  { %1502 = vadd.xlane.f32.xlu1 %v1501_v25  ;;  %v1498_v33 = vsel %vm1494_vm0, %v1487_v24, 0.0  ;;  %v1489_v27 = vmul.f32 %v1754_v22, %v1618_v16  ;;  %v1467_v34 = vrot.slane %v1459_v30, 6 }
0x132a   :  { %1499 = vadd.xlane.f32.xlu0 %v1498_v33  ;;  %1757 = vtanh.f32 %v1466_v31 }
0x132b   :  { %1759 = vtanh.f32 %v1465_v58  ;;  %v1504_v38 = vsel %vm1494_vm0, %v1489_v27, 0.0 }
0x132c   :  { %1761 = vtanh.f32 %v1467_v34 }
0x132e   :  { %v1756_v36 = vpop.eup %1755 }
0x132f   :  { %1505 = vadd.xlane.f32.xlu2 %v1504_v38  ;;  %v1490_v41 = vmul.f32 %v1756_v36, %v1618_v16 }
0x1330   :  { %v1758_v40 = vpop.eup %1757 }
0x1331   :  { %v1760_v56 = vpop.eup %1759  ;;  %v1492_v51 = vmul.f32 %v1758_v40, %v1618_v16  ;;  %v1507_v42 = vsel %vm1494_vm0, %v1490_v41, 0.0 }
0x1332   :  { %v1491_v4 = vmul.f32 %v1760_v56, %v1618_v16  ;;  %v1762_v44 = vpop.eup %1761 }
0x1333   :  { %v1513_v50 = vsel %vm1494_vm0, %v1492_v51, 0.0  ;;  %v1493_v39 = vmul.f32 %v1762_v44, %v1618_v16 }
0x1334   :  { %1514 = vadd.xlane.f32.xlu1 %v1513_v50  ;;  %v1510_v43 = vsel %vm1494_vm0, %v1491_v4, 0.0 }
0x1335   :  { %1511 = vadd.xlane.f32.xlu0 %v1510_v43  ;;  %v1516_v14 = vsel %vm1494_vm0, %v1493_v39, 0.0 }
0x1337   :  { %1508 = vadd.xlane.f32.xlu2 %v1507_v42 }
0x133f   :  { %1517 = vadd.xlane.f32.xlu2 %v1516_v14 }
0x139a   :  { %v1497_v45 = vpop.xlane.xlu2 %1496 }
0x139b   :  { %v1521_v57 = vadd.f32 %v1520_v52, %v1497_v45 }
0x139c   :  { %v1503_v54 = vpop.xlane.xlu1 %1502 }
0x139d   :  { %v1500_v46 = vpop.xlane.xlu0 %1499  ;;  %v1523_v59 = vadd.f32 %v1520_v52, %v1503_v54  ;;  %v1539_v35 = vperm.slane %v1521_v57, %v1538_v55 }
0x139e   :  { %v1522_v53 = vadd.f32 %v1520_v52, %v1500_v46 }
0x139f   :  { %v1541_v37 = vperm.slane %v1523_v59, %v1538_v55 }
0x13a0   :  { %v1540_v60 = vperm.slane %v1522_v53, %v1538_v55 }
0x13a2   :  { %v1506_v49 = vpop.xlane.xlu2 %1505  ;;  %v1548_v6 = vsel %vm1547_vm9, %v1540_v60, %v1539_v35 }
0x13a3   :  { %v1524_v61 = vadd.f32 %v1520_v52, %v1506_v49  ;;  %v1550_v63 = vsel %vm1549_vm14, %v1541_v37, %v1548_v6 }
0x13a5   :  { %v1542_v3 = vperm.slane %v1524_v61, %v1538_v55 }
0x13a7   :  { %v1515_v11 = vpop.xlane.xlu1 %1514  ;;  %v1552_v15 = vsel %vm1551_vm15, %v1542_v3, %v1550_v63 }
0x13a8   :  { %v1512_v1 = vpop.xlane.xlu0 %1511  ;;  %v1527_v13 = vadd.f32 %v1520_v52, %v1515_v11 }
0x13a9   :  { %v1526_v9 = vadd.f32 %v1520_v52, %v1512_v1 }
0x13aa   :  { %v1509_v47 = vpop.xlane.xlu2 %1508  ;;  %v1545_v0 = vperm.slane %v1527_v13, %v1538_v55 }
0x13ab   :  { %v1525_v7 = vadd.f32 %v1520_v52, %v1509_v47  ;;  %v1544_v62 = vperm.slane %v1526_v9, %v1538_v55 }
0x13ad   :  { %v1543_v12 = vperm.slane %v1525_v7, %v1538_v55 }
0x13af   :  { %v1554_v18 = vsel %vm1553_vm1, %v1543_v12, %v1552_v15 }
0x13b0   :  { %v1556_v5 = vsel %vm1555_vm2, %v1544_v62, %v1554_v18 }
0x13b1   :  { %v1558_v16 = vsel %vm1557_vm3, %v1545_v0, %v1556_v5 }
0x13b2   :  { %v1518_v2 = vpop.xlane.xlu2 %1517 }
0x13b3   :  { %v1528_v8 = vadd.f32 %v1520_v52, %v1518_v2 }
0x13b5   :  { %v1546_v10 = vperm.slane %v1528_v8, %v1538_v55 }
0x13b7   :  { %v1560_v17 = vsel %vm1559_vm4, %v1546_v10, %v1558_v16 }
0x13b8   :  { %1563 = vst.msk [vmem:[%s2324_s8] sm:$0xff] %vm1562_vm10, %v1560_v17 }
0x13b9   :  { %1568 = vsyncpa [#allocation8], 1 }
0x13ba   :  { %1569 = vsyncpa [#allocation10], 1 }

</bundles_post_ra>
